<compile_context>
chip_gen: v6e
topology: v6e:2x2x1
jax: 0.10.0
libtpu: 0.0.40
codegen_flags: <defaults>
</compile_context>

<pallas_src>
import functools
import math

import jax
import jax.numpy as jnp
from jax.experimental import pallas as pl
from jax.experimental.pallas import tpu as pltpu


def _layernorm(x, gamma, beta, eps=1e-5):
    x = x.astype(jnp.float32)
    mu = jnp.mean(x, axis=-1, keepdims=True)
    var = jnp.mean((x - mu) * (x - mu), axis=-1, keepdims=True)
    return (x - mu) * jax.lax.rsqrt(var + eps) * gamma.astype(jnp.float32) \
        + beta.astype(jnp.float32)


# ------------------------------- kernel --------------------------------------

def _mab_kernel(*refs, num_heads, dim_V, n_q, n_k, layer_norm, matmul_dtype):
    if layer_norm:
        (q_ref, k_ref, wq, bq, wkv, bkv, wo, bo,
         g0, be0, g1, be1, out_ref, qh_sc, acc_sc) = refs
    else:
        (q_ref, k_ref, wq, bq, wkv, bkv, wo, bo,
         out_ref, qh_sc, acc_sc) = refs

    H = num_heads
    ds = dim_V // H
    nq_pad = q_ref.shape[1]
    tk = k_ref.shape[1]
    kt = pl.program_id(1)
    nkt = pl.num_programs(1)

    cdt = jnp.float32 if matmul_dtype is None else matmul_dtype

    def proj(x2d, w_ref, b_ref):
        # x2d: (n, d_in), w: (Hb, d_in, ds), b: (Hb, 1, ds)  ->  (Hb, n, ds) f32
        w = w_ref[...].astype(cdt)
        xb = jnp.broadcast_to(x2d.astype(cdt), (w.shape[0],) + x2d.shape)
        y = jnp.einsum("hnd,hdf->hnf", xb, w,
                       preferred_element_type=jnp.float32)
        return y + b_ref[...].astype(jnp.float32)

    # ---- once per batch row: Q heads, residual init, fold the score scale ----
    @pl.when(kt == 0)
    def _init():
        q_h = proj(q_ref[0], wq, bq)                  # (H, nq_pad, ds)
        acc_sc[...] = q_h                             # out = Q_ + sum_k A @ V_
        qh_sc[...] = q_h * (1.0 / math.sqrt(dim_V))   # scale folded in once

    # ---- every key tile: fused K/V projection, query-axis softmax, A @ V ----
    k_in = k_ref[0]                                   # (tk, d_k_pad)
    kv_h = proj(k_in, wkv, bkv)                       # (2H, tk, ds): [K heads; V heads]
    k_h = kv_h[:H]                                    # leading-axis slices: no relayout
    v_h = kv_h[H:]

    if n_k % tk != 0:
        # padded key rows: zero their V rows so their A @ V contribution vanishes
        key_idx = kt * tk + jax.lax.broadcasted_iota(jnp.int32, (1, tk, 1), 1)
        v_h = jnp.where(key_idx < n_k, v_h, 0.0)

    # scores (H, nq_pad, tk); contraction is last-dim/last-dim => no K^T relayout
    s = jnp.einsum("hqd,hkd->hqk", qh_sc[...].astype(cdt), k_h.astype(cdt),
                   preferred_element_type=jnp.float32)

    # softmax over the *query* axis (matches torch.softmax(scores, 1))
    s_max = jnp.max(s, axis=1, keepdims=True)         # (H, 1, tk)
    e = jnp.exp(s - s_max)
    if nq_pad != n_q:
        # padded query rows must not pollute the per-key-column denominator
        q_idx = jax.lax.broadcasted_iota(jnp.int32, (1, nq_pad, 1), 1)
        e = jnp.where(q_idx < n_q, e, 0.0)
    denom = jnp.sum(e, axis=1, keepdims=True)         # (H, 1, tk), always > 0
    # exact reciprocal in f32 mode; approx (EUP) is fine at bf16 accuracy
    inv = pl.reciprocal(denom, approx=(matmul_dtype is not None))
    a = e * inv

    acc_sc[...] += jnp.einsum("hqk,hkd->hqd", a.astype(cdt), v_h.astype(cdt),
                              preferred_element_type=jnp.float32)

    # ---- last key tile: merge heads, LayerNorm / FFN / residual, write out ----
    @pl.when(kt == nkt - 1)
    def _finalize():
        o_h = acc_sc[...]                             # (H, nq_pad, ds) f32
        out = jnp.concatenate([o_h[h] for h in range(H)], axis=-1)  # (nq_pad, dim_V)
        if layer_norm:
            out = _layernorm(out, g0[...], be0[...])
        hidden = jnp.dot(out.astype(cdt), wo[...].astype(cdt),
                         preferred_element_type=jnp.float32) \
            + bo[...].astype(jnp.float32)
        out = out + jnp.maximum(hidden, 0.0)
        if layer_norm:
            out = _layernorm(out, g1[...], be1[...])
        out_ref[0] = out.astype(out_ref.dtype)


# ------------------------------- wrapper --------------------------------------

def _round_up(x, m):
    return ((x + m - 1) // m) * m


def mab_forward(Q, K, params, *, num_heads, layer_norm=False,
                matmul_dtype=None, key_tile=512):
    """Pallas MAB forward.  Q: (B, Nq, dim_Q), K: (B, Nk, dim_K).

    Linear weights are stored pre-transposed as (in_features, out_features),
    i.e. y = x @ W + b  (== PyTorch's x @ weight.T + bias).
    """
    B, n_q, dim_Q = Q.shape
    _, n_k, dim_K = K.shape
    dim_V = params["wq"].shape[1]
    assert dim_V % num_heads == 0
    H = num_heads
    ds = dim_V // H
    out_dtype = Q.dtype

    # --- wrapper-side layout plumbing (all exact) ---
    d_q_pad = _round_up(dim_Q, 128)            # lane-dense contraction dims
    d_k_pad = _round_up(dim_K, 128)
    nq_pad = _round_up(n_q, 8)                 # sublane-aligned sequence dims
    tk = _round_up(n_k, 8) if n_k <= key_tile else key_tile
    nk_pad = _round_up(n_k, tk)
    nkt = nk_pad // tk

    cdt = matmul_dtype if matmul_dtype is not None else Q.dtype

    Qp = jnp.pad(Q, ((0, 0), (0, nq_pad - n_q), (0, d_q_pad - dim_Q))).astype(cdt)
    Kp = jnp.pad(K, ((0, 0), (0, nk_pad - n_k), (0, d_k_pad - dim_K))).astype(cdt)

    def head_major(w, b, d_in, d_in_pad):
        # (d_in, H*ds) -> (H, d_in_pad, ds);  (1, H*ds) -> (H, 1, ds)
        w = jnp.pad(w, ((0, d_in_pad - d_in), (0, 0)))
        w_h = jnp.transpose(w.reshape(d_in_pad, H, ds), (1, 0, 2))
        b_h = b.reshape(H, ds)[:, None, :]
        return w_h.astype(cdt), b_h.astype(cdt)

    wq_h, bq_h = head_major(params["wq"], params["bq"], dim_Q, d_q_pad)
    wk_h, bk_h = head_major(params["wk"], params["bk"], dim_K, d_k_pad)
    wv_h, bv_h = head_major(params["wv"], params["bv"], dim_K, d_k_pad)
    # fused K/V head-stack: one projection einsum per key tile in the kernel
    wkv_h = jnp.concatenate([wk_h, wv_h], axis=0)     # (2H, d_k_pad, ds)
    bkv_h = jnp.concatenate([bk_h, bv_h], axis=0)     # (2H, 1, ds)
    wo = params["wo"].astype(cdt)
    bo = params["bo"].astype(cdt)

    def full(a):
        return pl.BlockSpec(a.shape, lambda b, kt: (0,) * a.ndim)

    in_arrays = [Qp, Kp, wq_h, bq_h, wkv_h, bkv_h, wo, bo]
    in_specs = [
        pl.BlockSpec((1, nq_pad, d_q_pad), lambda b, kt: (b, 0, 0)),
        pl.BlockSpec((1, tk, d_k_pad), lambda b, kt: (b, kt, 0)),
        full(wq_h), full(bq_h), full(wkv_h), full(bkv_h), full(wo), full(bo),
    ]
    if layer_norm:
        ln = [params["ln0_g"], params["ln0_b"], params["ln1_g"], params["ln1_b"]]
        in_arrays += ln
        in_specs += [full(a) for a in ln]

    kernel = functools.partial(
        _mab_kernel, num_heads=H, dim_V=dim_V, n_q=n_q, n_k=n_k,
        layer_norm=layer_norm, matmul_dtype=matmul_dtype)

    out = pl.pallas_call(
        kernel,
        out_shape=jax.ShapeDtypeStruct((B, nq_pad, dim_V), out_dtype),
        grid=(B, nkt),
        in_specs=in_specs,
        out_specs=pl.BlockSpec((1, nq_pad, dim_V), lambda b, kt: (b, 0, 0)),
        scratch_shapes=[pltpu.VMEM((H, nq_pad, ds), jnp.float32),   # scaled Q heads
                        pltpu.VMEM((H, nq_pad, ds), jnp.float32)],  # residual + A@V acc
        compiler_params=pltpu.CompilerParams(
            dimension_semantics=("parallel", "arbitrary"),
            vmem_limit_bytes=48 * 1024 * 1024),
    )(*in_arrays)

    return out[:, :n_q, :]


# --------------------------- pure-JAX reference -------------------------------

def mab_reference(Q, K, params, *, num_heads, layer_norm=False):
    dim_V = params["wq"].shape[1]
    Qp = Q @ params["wq"] + params["bq"]
    Kp = K @ params["wk"] + params["bk"]
    Vp = K @ params["wv"] + params["bv"]

    def split_cat(x):  # torch.cat(x.split(ds, 2), dim=0)
        return jnp.concatenate(jnp.split(x, num_heads, axis=2), axis=0)

    Q_, K_, V_ = split_cat(Qp), split_cat(Kp), split_cat(Vp)
    s = jnp.einsum("bqd,bkd->bqk", Q_, K_) / math.sqrt(dim_V)
    A = jax.nn.softmax(s, axis=1)                      # dim=1 as in the module
    out = Q_ + jnp.einsum("bqk,bkd->bqd", A, V_)
    out = jnp.concatenate(jnp.split(out, num_heads, axis=0), axis=2)
    if layer_norm:
        out = _layernorm(out, params["ln0_g"], params["ln0_b"])
    out = out + jax.nn.relu(out @ params["wo"] + params["bo"])
    if layer_norm:
        out = _layernorm(out, params["ln1_g"], params["ln1_b"])
    return out


# ------------------------------- param init -----------------------------------

def init_params(key, dim_Q, dim_K, dim_V, layer_norm=False):
    """nn.Linear-style init (uniform +/- 1/sqrt(fan_in)); weights stored (in, out)."""
    ks = jax.random.split(key, 8)

    def linear(kw, kb, fan_in, fan_out):
        bound = 1.0 / math.sqrt(fan_in)
        w = jax.random.uniform(kw, (fan_in, fan_out), jnp.float32, -bound, bound)
        b = jax.random.uniform(kb, (1, fan_out), jnp.float32, -bound, bound)
        return w, b

    p = {}
    p["wq"], p["bq"] = linear(ks[0], ks[1], dim_Q, dim_V)
    p["wk"], p["bk"] = linear(ks[2], ks[3], dim_K, dim_V)
    p["wv"], p["bv"] = linear(ks[4], ks[5], dim_K, dim_V)
    p["wo"], p["bo"] = linear(ks[6], ks[7], dim_V, dim_V)
    if layer_norm:
        p["ln0_g"] = jnp.ones((1, dim_V), jnp.float32)
        p["ln0_b"] = jnp.zeros((1, dim_V), jnp.float32)
        p["ln1_g"] = jnp.ones((1, dim_V), jnp.float32)
        p["ln1_b"] = jnp.zeros((1, dim_V), jnp.float32)
    return p


# TODO(synk): the `graph is not None` branch (message-passing Conv + to_dense_batch)
# has no clean Pallas equivalent and is not implemented.

if __name__ == "__main__":
    B, Nq, Nk = 2, 8, 8
    dim_Q = dim_K = dim_V = 32
    num_heads = 4

    key = jax.random.PRNGKey(0)
    kq, kk, kp = jax.random.split(key, 3)
    Q = jax.random.normal(kq, (B, Nq, dim_Q), jnp.float32)
    K = jax.random.normal(kk, (B, Nk, dim_K), jnp.float32)
    params = init_params(kp, dim_Q, dim_K, dim_V, layer_norm=False)

    # 1) f32, no LayerNorm (module default).
    out = jax.block_until_ready(
        mab_forward(Q, K, params, num_heads=num_heads, layer_norm=False))
    ref = mab_reference(Q, K, params, num_heads=num_heads, layer_norm=False)
    assert out.shape == (B, Nq, dim_V)
    assert jnp.allclose(out, ref, rtol=2e-5, atol=2e-5), "f32 mismatch vs reference"

    # 2) f32 with LayerNorm.
    params_ln = init_params(kp, dim_Q, dim_K, dim_V, layer_norm=True)
    out_ln = jax.block_until_ready(
        mab_forward(Q, K, params_ln, num_heads=num_heads, layer_norm=True))
    ref_ln = mab_reference(Q, K, params_ln, num_heads=num_heads, layer_norm=True)
    assert jnp.allclose(out_ln, ref_ln, rtol=2e-5, atol=2e-5), "LN mismatch vs reference"

    # 3) ragged Nq/Nk (exercises the query/key padding masks).
    Nq2, Nk2 = 5, 11
    Q2 = jax.random.normal(jax.random.PRNGKey(1), (B, Nq2, dim_Q), jnp.float32)
    K2 = jax.random.normal(jax.random.PRNGKey(2), (B, Nk2, dim_K), jnp.float32)
    out_rg = jax.block_until_ready(
        mab_forward(Q2, K2, params, num_heads=num_heads, layer_norm=False))
    ref_rg = mab_reference(Q2, K2, params, num_heads=num_heads, layer_norm=False)
    assert out_rg.shape == (B, Nq2, dim_V)
    assert jnp.allclose(out_rg, ref_rg, rtol=2e-5, atol=2e-5), "ragged mismatch"

    # 4) bf16 MXU operands (f32 accumulation / softmax) — loose tolerance.
    out_bf16 = jax.block_until_ready(
        mab_forward(Q, K, params, num_heads=num_heads, layer_norm=False,
                    matmul_dtype=jnp.bfloat16))
    assert jnp.allclose(out_bf16, ref, rtol=5e-2, atol=5e-2), "bf16 mismatch"

    # 5) multi key-tile path (key_tile=8, ragged Nk) — exercises the key-axis
    #    accumulator across grid steps and the padded-key V masking.
    Nk3 = 43
    K3 = jax.random.normal(jax.random.PRNGKey(3), (B, Nk3, dim_K), jnp.float32)
    out_mt = jax.block_until_ready(
        mab_forward(Q, K3, params, num_heads=num_heads, layer_norm=False, key_tile=8))
    ref_mt = mab_reference(Q, K3, params, num_heads=num_heads, layer_norm=False)
    assert jnp.allclose(out_mt, ref_mt, rtol=2e-5, atol=2e-5), "multi-tile mismatch"

    print("KERNEL_OK")
</pallas_src>

<mosaic_0001>
module attributes {stable_mosaic.version = 11 : i64} {
  func.func @_mab_kernel(%arg0: i32, %arg1: i32, %arg2: memref<1x8x128xf32, #tpu.memory_space<vmem>>, %arg3: memref<1x8x128xf32, #tpu.memory_space<vmem>>, %arg4: memref<4x128x8xf32, #tpu.memory_space<vmem>>, %arg5: memref<4x1x8xf32, #tpu.memory_space<vmem>>, %arg6: memref<8x128x8xf32, #tpu.memory_space<vmem>>, %arg7: memref<8x1x8xf32, #tpu.memory_space<vmem>>, %arg8: memref<32x32xf32, #tpu.memory_space<vmem>>, %arg9: memref<1x32xf32, #tpu.memory_space<vmem>>, %arg10: memref<1x8x32xf32, #tpu.memory_space<vmem>>, %arg11: memref<4x8x8xf32, #tpu.memory_space<vmem>>, %arg12: memref<4x8x8xf32, #tpu.memory_space<vmem>>) attributes {dimension_semantics = [#tpu.dimension_semantics<parallel>, #tpu.dimension_semantics<arbitrary>], iteration_bounds = array<i64: 2, 1>, scalar_prefetch = 0 : i64, scratch_operands = 2 : i64, tpu.core_type = #tpu.core_type<tc>, window_params = [{transform_indices = @transform_0, window_bounds = array<i64: 1, 8, 128>}, {transform_indices = @transform_1, window_bounds = array<i64: 1, 8, 128>}, {pipeline_mode = #tpu.pipeline_mode<synchronous>, transform_indices = @transform_2, window_bounds = array<i64: 4, 128, 8>}, {pipeline_mode = #tpu.pipeline_mode<synchronous>, transform_indices = @transform_3, window_bounds = array<i64: 4, 1, 8>}, {pipeline_mode = #tpu.pipeline_mode<synchronous>, transform_indices = @transform_4, window_bounds = array<i64: 8, 128, 8>}, {pipeline_mode = #tpu.pipeline_mode<synchronous>, transform_indices = @transform_5, window_bounds = array<i64: 8, 1, 8>}, {pipeline_mode = #tpu.pipeline_mode<synchronous>, transform_indices = @transform_6, window_bounds = array<i64: 32, 32>}, {pipeline_mode = #tpu.pipeline_mode<synchronous>, transform_indices = @transform_7, window_bounds = array<i64: 1, 32>}, {transform_indices = @transform_8, window_bounds = array<i64: 1, 8, 32>}]} {
    %c0_i32 = arith.constant 0 : i32
    %0 = arith.cmpi eq, %arg1, %c0_i32 : i32
    %1 = arith.extui %0 : i1 to i32
    %c0_i32_0 = arith.constant 0 : i32
    %2 = arith.cmpi ne, %1, %c0_i32_0 : i32
    scf.if %2 {
      %c0_24 = arith.constant 0 : index
      %c0_25 = arith.constant 0 : index
      %c0_26 = arith.constant 0 : index
      %33 = vector.load %arg2[%c0_24, %c0_25, %c0_26] : memref<1x8x128xf32, #tpu.memory_space<vmem>>, vector<1x8x128xf32>
      %34 = vector.shape_cast %33 : vector<1x8x128xf32> to vector<8x128xf32>
      %c0_27 = arith.constant 0 : index
      %c0_28 = arith.constant 0 : index
      %c0_29 = arith.constant 0 : index
      %35 = vector.load %arg4[%c0_27, %c0_28, %c0_29] : memref<4x128x8xf32, #tpu.memory_space<vmem>>, vector<4x128x8xf32>
      %36 = vector.shape_cast %34 : vector<8x128xf32> to vector<1x8x128xf32>
      %37 = vector.broadcast %36 : vector<1x8x128xf32> to vector<4x8x128xf32>
      "tpu.trace_start"() <{level = 10 : i32, message = "hnd,hdf->hnf"}> : () -> ()
      %cst_30 = arith.constant dense<0.000000e+00> : vector<4x8x8xf32>
      %38 = tpu.matmul %37, %35, %cst_30 {dimension_numbers = #tpu.dot_dimension_numbers<[2], [1], [1], [2], [0, 0, 0, 1, 1, 2], [0], [0]>} : vector<4x8x128xf32>, vector<4x128x8xf32>, vector<4x8x8xf32> -> vector<4x8x8xf32>
      "tpu.trace_stop"() : () -> ()
      %c0_31 = arith.constant 0 : index
      %c0_32 = arith.constant 0 : index
      %c0_33 = arith.constant 0 : index
      %39 = vector.load %arg5[%c0_31, %c0_32, %c0_33] : memref<4x1x8xf32, #tpu.memory_space<vmem>>, vector<4x1x8xf32>
      %40 = vector.broadcast %39 : vector<4x1x8xf32> to vector<4x8x8xf32>
      %41 = arith.addf %38, %40 : vector<4x8x8xf32>
      %c0_34 = arith.constant 0 : index
      %c0_35 = arith.constant 0 : index
      %c0_36 = arith.constant 0 : index
      %42 = vector.load %arg12[%c0_34, %c0_35, %c0_36] : memref<4x8x8xf32, #tpu.memory_space<vmem>>, vector<4x8x8xf32>
      tpu.vector_store %arg12[%c0_34, %c0_35, %c0_36], %41 {strides = array<i32>} : memref<4x8x8xf32, #tpu.memory_space<vmem>>, vector<4x8x8xf32>,
      %cst_37 = arith.constant 0.176776692 : f32
      %43 = vector.broadcast %cst_37 : f32 to vector<4x8x8xf32>
      %44 = arith.mulf %41, %43 : vector<4x8x8xf32>
      %c0_38 = arith.constant 0 : index
      %c0_39 = arith.constant 0 : index
      %c0_40 = arith.constant 0 : index
      %45 = vector.load %arg11[%c0_38, %c0_39, %c0_40] : memref<4x8x8xf32, #tpu.memory_space<vmem>>, vector<4x8x8xf32>
      tpu.vector_store %arg11[%c0_38, %c0_39, %c0_40], %44 {strides = array<i32>} : memref<4x8x8xf32, #tpu.memory_space<vmem>>, vector<4x8x8xf32>,
    } else {
    }
    %c0 = arith.constant 0 : index
    %c0_1 = arith.constant 0 : index
    %c0_2 = arith.constant 0 : index
    %3 = vector.load %arg3[%c0, %c0_1, %c0_2] : memref<1x8x128xf32, #tpu.memory_space<vmem>>, vector<1x8x128xf32>
    %4 = vector.shape_cast %3 : vector<1x8x128xf32> to vector<8x128xf32>
    %c0_3 = arith.constant 0 : index
    %c0_4 = arith.constant 0 : index
    %c0_5 = arith.constant 0 : index
    %5 = vector.load %arg6[%c0_3, %c0_4, %c0_5] : memref<8x128x8xf32, #tpu.memory_space<vmem>>, vector<8x128x8xf32>
    %6 = vector.shape_cast %4 : vector<8x128xf32> to vector<1x8x128xf32>
    %7 = vector.broadcast %6 : vector<1x8x128xf32> to vector<8x8x128xf32>
    "tpu.trace_start"() <{level = 10 : i32, message = "hnd,hdf->hnf"}> : () -> ()
    %cst = arith.constant dense<0.000000e+00> : vector<8x8x8xf32>
    %8 = tpu.matmul %7, %5, %cst {dimension_numbers = #tpu.dot_dimension_numbers<[2], [1], [1], [2], [0, 0, 0, 1, 1, 2], [0], [0]>} : vector<8x8x128xf32>, vector<8x128x8xf32>, vector<8x8x8xf32> -> vector<8x8x8xf32>
    "tpu.trace_stop"() : () -> ()
    %c0_6 = arith.constant 0 : index
    %c0_7 = arith.constant 0 : index
    %c0_8 = arith.constant 0 : index
    %9 = vector.load %arg7[%c0_6, %c0_7, %c0_8] : memref<8x1x8xf32, #tpu.memory_space<vmem>>, vector<8x1x8xf32>
    %10 = vector.broadcast %9 : vector<8x1x8xf32> to vector<8x8x8xf32>
    %11 = arith.addf %8, %10 : vector<8x8x8xf32>
    %12 = vector.extract_strided_slice %11 {offsets = [0, 0, 0], sizes = [4, 8, 8], strides = [1, 1, 1]} : vector<8x8x8xf32> to vector<4x8x8xf32>
    %13 = vector.extract_strided_slice %11 {offsets = [4, 0, 0], sizes = [4, 8, 8], strides = [1, 1, 1]} : vector<8x8x8xf32> to vector<4x8x8xf32>
    %c0_9 = arith.constant 0 : index
    %c0_10 = arith.constant 0 : index
    %c0_11 = arith.constant 0 : index
    %14 = vector.load %arg11[%c0_9, %c0_10, %c0_11] : memref<4x8x8xf32, #tpu.memory_space<vmem>>, vector<4x8x8xf32>
    "tpu.trace_start"() <{level = 10 : i32, message = "hqd,hkd->hqk"}> : () -> ()
    %cst_12 = arith.constant dense<0.000000e+00> : vector<4x8x8xf32>
    %15 = tpu.matmul %14, %12, %cst_12 {dimension_numbers = #tpu.dot_dimension_numbers<[2], [2], [1], [1], [0, 0, 0, 1, 1, 1], [0], [0]>} : vector<4x8x8xf32>, vector<4x8x8xf32>, vector<4x8x8xf32> -> vector<4x8x8xf32>
    "tpu.trace_stop"() : () -> ()
    %cst_13 = arith.constant dense<0xFF800000> : vector<4x8xf32>
    %16 = vector.multi_reduction <maximumf>, %15, %cst_13 [1] : vector<4x8x8xf32> to vector<4x8xf32>
    %17 = vector.shape_cast %16 : vector<4x8xf32> to vector<4x1x8xf32>
    %18 = vector.broadcast %17 : vector<4x1x8xf32> to vector<4x8x8xf32>
    %19 = arith.subf %15, %18 : vector<4x8x8xf32>
    %20 = math.exp %19 : vector<4x8x8xf32>
    %cst_14 = arith.constant dense<0.000000e+00> : vector<4x8xf32>
    %21 = vector.multi_reduction <add>, %20, %cst_14 [1] : vector<4x8x8xf32> to vector<4x8xf32>
    %22 = vector.shape_cast %21 : vector<4x8xf32> to vector<4x1x8xf32>
    %23 = tpu.reciprocal %22 : vector<4x1x8xf32> -> vector<4x1x8xf32>
    %24 = vector.broadcast %23 : vector<4x1x8xf32> to vector<4x8x8xf32>
    %25 = arith.mulf %20, %24 : vector<4x8x8xf32>
    %c0_15 = arith.constant 0 : index
    %c0_16 = arith.constant 0 : index
    %c0_17 = arith.constant 0 : index
    %26 = vector.load %arg12[%c0_15, %c0_16, %c0_17] : memref<4x8x8xf32, #tpu.memory_space<vmem>>, vector<4x8x8xf32>
    "tpu.trace_start"() <{level = 10 : i32, message = "hqk,hkd->hqd"}> : () -> ()
    %cst_18 = arith.constant dense<0.000000e+00> : vector<4x8x8xf32>
    %27 = tpu.matmul %25, %13, %cst_18 {dimension_numbers = #tpu.dot_dimension_numbers<[2], [1], [1], [2], [0, 0, 0, 1, 1, 2], [0], [0]>} : vector<4x8x8xf32>, vector<4x8x8xf32>, vector<4x8x8xf32> -> vector<4x8x8xf32>
    "tpu.trace_stop"() : () -> ()
    %28 = arith.addf %26, %27 : vector<4x8x8xf32>
    %c0_19 = arith.constant 0 : index
    %c0_20 = arith.constant 0 : index
    %c0_21 = arith.constant 0 : index
    %29 = vector.load %arg12[%c0_19, %c0_20, %c0_21] : memref<4x8x8xf32, #tpu.memory_space<vmem>>, vector<4x8x8xf32>
    tpu.vector_store %arg12[%c0_19, %c0_20, %c0_21], %28 {strides = array<i32>} : memref<4x8x8xf32, #tpu.memory_space<vmem>>, vector<4x8x8xf32>,
    %c0_i32_22 = arith.constant 0 : i32
    %30 = arith.cmpi eq, %arg1, %c0_i32_22 : i32
    %31 = arith.extui %30 : i1 to i32
    %c0_i32_23 = arith.constant 0 : i32
    %32 = arith.cmpi ne, %31, %c0_i32_23 : i32
    scf.if %32 {
      %c0_24 = arith.constant 0 : index
      %c0_25 = arith.constant 0 : index
      %c0_26 = arith.constant 0 : index
      %33 = vector.load %arg12[%c0_24, %c0_25, %c0_26] : memref<4x8x8xf32, #tpu.memory_space<vmem>>, vector<4x8x8xf32>
      %34 = vector.extract_strided_slice %33 {offsets = [0, 0, 0], sizes = [1, 8, 8], strides = [1, 1, 1]} : vector<4x8x8xf32> to vector<1x8x8xf32>
      %35 = vector.shape_cast %34 : vector<1x8x8xf32> to vector<8x8xf32>
      %36 = vector.extract_strided_slice %33 {offsets = [1, 0, 0], sizes = [1, 8, 8], strides = [1, 1, 1]} : vector<4x8x8xf32> to vector<1x8x8xf32>
      %37 = vector.shape_cast %36 : vector<1x8x8xf32> to vector<8x8xf32>
      %38 = vector.extract_strided_slice %33 {offsets = [2, 0, 0], sizes = [1, 8, 8], strides = [1, 1, 1]} : vector<4x8x8xf32> to vector<1x8x8xf32>
      %39 = vector.shape_cast %38 : vector<1x8x8xf32> to vector<8x8xf32>
      %40 = vector.extract_strided_slice %33 {offsets = [3, 0, 0], sizes = [1, 8, 8], strides = [1, 1, 1]} : vector<4x8x8xf32> to vector<1x8x8xf32>
      %41 = vector.shape_cast %40 : vector<1x8x8xf32> to vector<8x8xf32>
      %42 = tpu.concatenate %35, %37, %39, %41 in 1 : vector<8x8xf32>, vector<8x8xf32>, vector<8x8xf32>, vector<8x8xf32> -> vector<8x32xf32>
      %c0_27 = arith.constant 0 : index
      %c0_28 = arith.constant 0 : index
      %43 = vector.load %arg8[%c0_27, %c0_28] : memref<32x32xf32, #tpu.memory_space<vmem>>, vector<32x32xf32>
      %cst_29 = arith.constant dense<0.000000e+00> : vector<8x32xf32>
      %44 = tpu.matmul %42, %43, %cst_29 {dimension_numbers = #tpu.dot_dimension_numbers<[1], [0], [0], [1], [0, 0, 1, 1], [], []>} : vector<8x32xf32>, vector<32x32xf32>, vector<8x32xf32> -> vector<8x32xf32>
      %c0_30 = arith.constant 0 : index
      %c0_31 = arith.constant 0 : index
      %45 = vector.load %arg9[%c0_30, %c0_31] : memref<1x32xf32, #tpu.memory_space<vmem>>, vector<1x32xf32>
      %46 = vector.broadcast %45 : vector<1x32xf32> to vector<8x32xf32>
      %47 = arith.addf %44, %46 : vector<8x32xf32>
      %cst_32 = arith.constant 0.000000e+00 : f32
      %48 = vector.broadcast %cst_32 : f32 to vector<8x32xf32>
      %49 = arith.maximumf %47, %48 : vector<8x32xf32>
      %50 = arith.addf %42, %49 : vector<8x32xf32>
      %c0_33 = arith.constant 0 : index
      %c0_34 = arith.constant 0 : index
      %c0_35 = arith.constant 0 : index
      %51 = vector.load %arg10[%c0_33, %c0_34, %c0_35] : memref<1x8x32xf32, #tpu.memory_space<vmem>>, vector<1x8x32xf32>
      %52 = vector.shape_cast %51 : vector<1x8x32xf32> to vector<8x32xf32>
      %53 = vector.shape_cast %50 : vector<8x32xf32> to vector<1x8x32xf32>
      tpu.vector_store %arg10[%c0_33, %c0_34, %c0_35], %53 {strides = array<i32>} : memref<1x8x32xf32, #tpu.memory_space<vmem>>, vector<1x8x32xf32>,
    } else {
    }
    return
  }
  func.func @transform_0(%arg0: i32, %arg1: i32) -> (i32, i32, i32) {
    %c0_i32 = arith.constant 0 : i32
    %c0_i32_0 = arith.constant 0 : i32
    %c0_i32_1 = arith.constant 0 : i32
    return %arg0, %c0_i32, %c0_i32_0 : i32, i32, i32
  }
  func.func @transform_1(%arg0: i32, %arg1: i32) -> (i32, i32, i32) {
    %c0_i32 = arith.constant 0 : i32
    %c0_i32_0 = arith.constant 0 : i32
    return %arg0, %arg1, %c0_i32 : i32, i32, i32
  }
  func.func @transform_2(%arg0: i32, %arg1: i32) -> (i32, i32, i32) {
    %c0_i32 = arith.constant 0 : i32
    %c0_i32_0 = arith.constant 0 : i32
    %c0_i32_1 = arith.constant 0 : i32
    %c0_i32_2 = arith.constant 0 : i32
    return %c0_i32, %c0_i32_0, %c0_i32_1 : i32, i32, i32
  }
  func.func @transform_3(%arg0: i32, %arg1: i32) -> (i32, i32, i32) {
    %c0_i32 = arith.constant 0 : i32
    %c0_i32_0 = arith.constant 0 : i32
    %c0_i32_1 = arith.constant 0 : i32
    %c0_i32_2 = arith.constant 0 : i32
    return %c0_i32, %c0_i32_0, %c0_i32_1 : i32, i32, i32
  }
  func.func @transform_4(%arg0: i32, %arg1: i32) -> (i32, i32, i32) {
    %c0_i32 = arith.constant 0 : i32
    %c0_i32_0 = arith.constant 0 : i32
    %c0_i32_1 = arith.constant 0 : i32
    %c0_i32_2 = arith.constant 0 : i32
    return %c0_i32, %c0_i32_0, %c0_i32_1 : i32, i32, i32
  }
  func.func @transform_5(%arg0: i32, %arg1: i32) -> (i32, i32, i32) {
    %c0_i32 = arith.constant 0 : i32
    %c0_i32_0 = arith.constant 0 : i32
    %c0_i32_1 = arith.constant 0 : i32
    %c0_i32_2 = arith.constant 0 : i32
    return %c0_i32, %c0_i32_0, %c0_i32_1 : i32, i32, i32
  }
  func.func @transform_6(%arg0: i32, %arg1: i32) -> (i32, i32) {
    %c0_i32 = arith.constant 0 : i32
    %c0_i32_0 = arith.constant 0 : i32
    %c0_i32_1 = arith.constant 0 : i32
    return %c0_i32, %c0_i32_0 : i32, i32
  }
  func.func @transform_7(%arg0: i32, %arg1: i32) -> (i32, i32) {
    %c0_i32 = arith.constant 0 : i32
    %c0_i32_0 = arith.constant 0 : i32
    %c0_i32_1 = arith.constant 0 : i32
    return %c0_i32, %c0_i32_0 : i32, i32
  }
  func.func @transform_8(%arg0: i32, %arg1: i32) -> (i32, i32, i32) {
    %c0_i32 = arith.constant 0 : i32
    %c0_i32_0 = arith.constant 0 : i32
    %c0_i32_1 = arith.constant 0 : i32
    return %arg0, %c0_i32, %c0_i32_0 : i32, i32, i32
  }
}

</mosaic_0001>

<bundles_post_ra>
// kernel: tpu_custom_call.1
= control target key start
LH: loop header
LB: loop body
LE: loop exit
PB: predicated region body
PF: predicated region fallthrough
CT: control target
= control target key end

     0   :  { %13 = vsyncpa [#allocation5], 0  ;;  %s4351_s0 = inlined_call_operand.vmem [shape: f32[2,8,128], index: 0, kind: input, shape index: {}]   ;;  %s4352_s1 = inlined_call_operand.vmem [shape: f32[2,8,128], index: 1, kind: input, shape index: {}]   ;;  %s4353_s2 = inlined_call_operand.vmem [shape: f32[4,128,8], index: 2, kind: input, shape index: {}]   ;;  %s4354_s3 = inlined_call_operand.vmem [shape: f32[4,1,8], index: 3, kind: input, shape index: {}]   ;;  %s4355_s4 = inlined_call_operand.vmem [shape: f32[8,128,8], index: 4, kind: input, shape index: {}]   ;;  %s4356_s5 = inlined_call_operand.vmem [shape: f32[8,1,8], index: 5, kind: input, shape index: {}]   ;;  %s4357_s6 = inlined_call_operand.vmem [shape: f32[32,32], index: 6, kind: input, shape index: {}]   ;;  %s4358_s7 = inlined_call_operand.vmem [shape: f32[1,32], index: 7, kind: input, shape index: {}]   ;;  %s4359_s8 = inlined_call_operand.hbm [shape: f32[2,8,32], index: 8, kind: output, shape index: {}]  }
   0x1   :  { %15 = vsyncpa [#allocation5 + $0x1], 0  ;;  %s3312_s27 = smov 0   ;;  %s3314_s28 = smov 0  }
   0x2   :  { %s3316_s29 = smov 0   ;;  %s3318_s30 = smov 0  }
   0x3   :  { %s3320_s9 = smov 0   ;;  %s3322_s10 = smov 0  }
   0x4 LB: > { %s2373_s11 = sadd.s32 4294967295, %s3259_s10   ;;  %s2374_s12 = sadd.s32 4294967294, %s3259_s10   ;;  %s3259_s10 = sphi %s3322_s10, %s21_s10   ;;  %s3255_s9 = sphi %s3320_s9, %s4366_s9   ;;  %s3251_s30 = sphi %s3318_s30, %s4365_s30   ;;  %s3247_s29 = sphi %s3316_s29, %s4364_s29   ;;  %s3243_s28 = sphi %s3314_s28, %s4363_s28   ;;  %s3239_s27 = sphi %s3312_s27, %s4362_s27  }
   0x5   : > { %s33_s13 = sadd.s32 1, %s3255_s9  ;;  %s220_s14 = sadd.s32 1, %s3247_s29 }
   0x6   : > { %p35_p0 = scmp.ge.s32.totalorder %s33_s13, 2  ;;  %p230_p1 = scmp.ne.s32.totalorder %s3247_s29, %s3243_s28 }
   0x7   : > { %p231_p2 = scmp.eq.s32.totalorder %s2373_s11, 1  ;;  %p236_p3 = scmp.ne.s32.totalorder %s3243_s28, %s3239_s27 }
   0x8   : > { %s4368_s13 = smov (%p35_p0, %s33_s13), 0  ;;  %p237_p5 = scmp.eq.s32.totalorder %s2374_s12, 1 }
   0x9   : > { %p3352_p4 = por %p231_p2, %p230_p1  ;;  %s217_s16 = ssub.s32 %s3255_s9, %s4368_s13 }
   0xa   : > { %p2377_p6 = scmp.ge.s32.totalorder %s3259_s10, 1  ;;  %p218_p7 = scmp.eq.s32.totalorder %s217_s16, 0 }
   0xb   : > { %p3359_p8 = por %p237_p5, %p236_p3  ;;  %p290_p9 = scmp.lt.s32.totalorder %s3259_s10, 3 }
   0xc   : > { %s3365_s18 = scalar_select %p218_p7, %s3247_s29, %s220_s14  }
   0xd   : > { %p291_p10 = pnand %p2377_p6, %p290_p9 }
   0xe   : > { %p330_p11 = scmp.lt.s32.totalorder (!%p291_p10), %s3251_s30, 1  ;;  %s3263_s22 = smov (!%p291_p10), 8  }
   0xf   : > { %294 = sbr.rel (%p291_p10) target bundleno = 1139 (0x473), region = 52  ;;  %s3264_s11 = smov (!%p291_p10), 16  }
  0x10   : > { %s3265_s14 = smov (!%p291_p10), 24   ;;  %s327_s16 = sand.u32 (!%p291_p10), 1, %s3243_s28  }
  0x11   : > { %s2408_s21 = sshll.u32 (!%p291_p10), %s3251_s30, 7 }
  0x12   : > { %s2289_s26 = scalar_lea.hbm (!%p291_p10), %s4359_s8, %s2408_s21 }
  0x14   : > { %v361_v0 = vld [vmem:[%s4353_s2 + $0x78] sm:$0xff]  ;;  %v3261_v2 = vmov 0.0   ;;  %v360_v3 = vld [vmem:[%s4353_s2 + $0x70] sm:$0xff]  ;;  %v359_v5 = vld [vmem:[%s4353_s2 + $0x68] sm:$0xff]  ;;  %s3463_s19 = scalar_select %p330_p11, %s3251_s30, 1  ;;  %vm3262_vm0 = vmmov 0  }
  0x15   : > { %v377_v1 = vld [vmem:[%s4353_s2 + $0xf8] sm:$0xff]  ;;  %2636 = vmatprep.subr.mxu0 %v3261_v2  ;;  %2671 = vmatprep.subr.mxu1 %v3261_v2  ;;  %v376_v4 = vld [vmem:[%s4353_s2 + $0xf0] sm:$0xff]  ;;  %v375_v6 = vld [vmem:[%s4353_s2 + $0xe8] sm:$0xff]  ;;  %vm718_vm1 = vcmask 64512   ;;  %vm2185_vm2 = vcmask 130048   ;;  %vm2187_vm3 = vcmask 195584  }
  0x16   : > { %2637 = vmatpush3.msra.mxu0 %v361_v0  ;;  %2672 = vmatpush3.msra.mxu1 %v377_v1  ;;  %v358_v7 = vld [vmem:[%s4353_s2 + $0x60] sm:$0xff]  ;;  %v357_v9 = vld [vmem:[%s4353_s2 + $0x58] sm:$0xff]  ;;  %v356_v11 = vld [vmem:[%s4353_s2 + $0x50] sm:$0xff]  ;;  %s2379_s12 = sshll.u32 %s3463_s19, 3  ;;  %vm2200_vm4 = vcmask 261120   ;;  %s2378_s19 = sshll.u32 %s327_s16, 3 }
  0x17   : > { %2638 = vmatprep.subr.mxu0 %v3261_v2  ;;  %2673 = vmatprep.subr.mxu1 %v3261_v2  ;;  %v374_v8 = vld [vmem:[%s4353_s2 + $0xe0] sm:$0xff]  ;;  %v373_v10 = vld [vmem:[%s4353_s2 + $0xd8] sm:$0xff]  ;;  %v372_v12 = vld [vmem:[%s4353_s2 + $0xd0] sm:$0xff]  ;;  %s333_s24 = scalar_lea.vmem %s4351_s0, %s2379_s12  ;;  %s340_s25 = scalar_lea.vmem %s4352_s1, %s2379_s12 }
  0x18   : > { %2639 = vmatpush3.msra.mxu0 %v360_v3  ;;  %2674 = vmatpush3.msra.mxu1 %v376_v4  ;;  %v355_v13 = vld [vmem:[%s4353_s2 + $0x48] sm:$0xff]  ;;  %v354_v15 = vld [vmem:[%s4353_s2 + $0x40] sm:$0xff]  ;;  %v353_v17 = vld [vmem:[%s4353_s2 + $0x38] sm:$0xff]  ;;  %s3266_s12 = smov [#allocation4]  }
  0x19   : > { %2640 = vmatprep.subr.mxu0 %v3261_v2  ;;  %2675 = vmatprep.subr.mxu1 %v3261_v2  ;;  %v371_v14 = vld [vmem:[%s4353_s2 + $0xc8] sm:$0xff]  ;;  %v370_v16 = vld [vmem:[%s4353_s2 + $0xc0] sm:$0xff]  ;;  %v369_v18 = vld [vmem:[%s4353_s2 + $0xb8] sm:$0xff]  ;;  %s3187_s20 = sshll.u32 %s3266_s12, 4  ;;  %s3188_s20 = int_to_ptr.vmem [resolvable:$false] %s3187_s20 }
  0x1a   : > { %2641 = vmatpush3.msra.mxu0 %v359_v5  ;;  %2676 = vmatpush3.msra.mxu1 %v375_v6  ;;  %v352_v19 = vld [vmem:[%s4353_s2 + $0x30] sm:$0xff]  ;;  %v351_v21 = vld [vmem:[%s4353_s2 + $0x28] sm:$0xff]  ;;  %v350_v23 = vld [vmem:[%s4353_s2 + $0x20] sm:$0xff]  ;;  %s3189_s30 = scalar_lea.vmem %s3188_s20, 256 }
  0x1b   : > { %2642 = vmatprep.subr.mxu0 %v3261_v2  ;;  %2677 = vmatprep.subr.mxu1 %v3261_v2  ;;  %v368_v20 = vld [vmem:[%s4353_s2 + $0xb0] sm:$0xff]  ;;  %v367_v22 = vld [vmem:[%s4353_s2 + $0xa8] sm:$0xff]  ;;  %v366_v24 = vld [vmem:[%s4353_s2 + $0xa0] sm:$0xff] }
  0x1c   : > { %2643 = vmatpush3.msra.mxu0 %v358_v7  ;;  %2678 = vmatpush3.msra.mxu1 %v374_v8  ;;  %v349_v25 = vld [vmem:[%s4353_s2 + $0x18] sm:$0xff]  ;;  %v348_v27 = vld [vmem:[%s4353_s2 + $0x10] sm:$0xff]  ;;  %v347_v29 = vld [vmem:[%s4353_s2 + $0x8] sm:$0xff] }
  0x1d   : > { %2644 = vmatprep.subr.mxu0 %v3261_v2  ;;  %2679 = vmatprep.subr.mxu1 %v3261_v2  ;;  %v365_v26 = vld [vmem:[%s4353_s2 + $0x98] sm:$0xff]  ;;  %v364_v28 = vld [vmem:[%s4353_s2 + $0x90] sm:$0xff]  ;;  %v363_v30 = vld [vmem:[%s4353_s2 + $0x88] sm:$0xff] }
  0x1e   : > { %2645 = vmatpush3.msra.mxu0 %v357_v9  ;;  %2680 = vmatpush3.msra.mxu1 %v373_v10  ;;  %v346_v31 = vld [vmem:[%s4353_s2] sm:$0xff]  ;;  %v393_v34 = vld [vmem:[%s4353_s2 + $0x178] sm:$0xff]  ;;  %v392_v36 = vld [vmem:[%s4353_s2 + $0x170] sm:$0xff] }
  0x1f   : > { %2646 = vmatprep.subr.mxu0 %v3261_v2  ;;  %2681 = vmatprep.subr.mxu1 %v3261_v2  ;;  %v362_v32 = vld [vmem:[%s4353_s2 + $0x80] sm:$0xff]  ;;  %v409_v35 = vld [vmem:[%s4353_s2 + $0x1f8] sm:$0xff]  ;;  %v408_v37 = vld [vmem:[%s4353_s2 + $0x1f0] sm:$0xff] }
  0x20   : > { %2647 = vmatpush3.msra.mxu0 %v356_v11  ;;  %2682 = vmatpush3.msra.mxu1 %v372_v12  ;;  %v3505_v33 = vld [vmem:[%s333_s24] sm:$0xff]  ;;  %v391_v38 = vld [vmem:[%s4353_s2 + $0x168] sm:$0xff]  ;;  %v389_v42 = vld [vmem:[%s4353_s2 + $0x158] sm:$0xff] }
  0x21   : > { %2648 = vmatprep.subr.mxu0 %v3261_v2  ;;  %2683 = vmatprep.subr.mxu1 %v3261_v2  ;;  %v407_v39 = vld [vmem:[%s4353_s2 + $0x1e8] sm:$0xff]  ;;  %v390_v40 = vld [vmem:[%s4353_s2 + $0x160] sm:$0xff]  ;;  %v405_v43 = vld [vmem:[%s4353_s2 + $0x1d8] sm:$0xff] }
  0x22   : > { %2649 = vmatpush3.msra.mxu0 %v355_v13  ;;  %2684 = vmatpush3.msra.mxu1 %v371_v14  ;;  %v406_v41 = vld [vmem:[%s4353_s2 + $0x1e0] sm:$0xff]  ;;  %v388_v44 = vld [vmem:[%s4353_s2 + $0x150] sm:$0xff]  ;;  %v387_v46 = vld [vmem:[%s4353_s2 + $0x148] sm:$0xff] }
  0x23   : > { %2650 = vmatprep.subr.mxu0 %v3261_v2  ;;  %2685 = vmatprep.subr.mxu1 %v3261_v2  ;;  %v404_v45 = vld [vmem:[%s4353_s2 + $0x1d0] sm:$0xff]  ;;  %v403_v47 = vld [vmem:[%s4353_s2 + $0x1c8] sm:$0xff]  ;;  %v386_v48 = vld [vmem:[%s4353_s2 + $0x140] sm:$0xff] }
  0x24   : > { %2651 = vmatpush3.msra.mxu0 %v354_v15  ;;  %2686 = vmatpush3.msra.mxu1 %v370_v16  ;;  %v402_v49 = vld [vmem:[%s4353_s2 + $0x1c0] sm:$0xff]  ;;  %v385_v50 = vld [vmem:[%s4353_s2 + $0x138] sm:$0xff]  ;;  %v384_v52 = vld [vmem:[%s4353_s2 + $0x130] sm:$0xff] }
  0x25   : > { %2652 = vmatprep.subr.mxu0 %v3261_v2  ;;  %2687 = vmatprep.subr.mxu1 %v3261_v2  ;;  %v401_v51 = vld [vmem:[%s4353_s2 + $0x1b8] sm:$0xff]  ;;  %v400_v53 = vld [vmem:[%s4353_s2 + $0x1b0] sm:$0xff]  ;;  %v383_v54 = vld [vmem:[%s4353_s2 + $0x128] sm:$0xff] }
  0x26   : > { %2653 = vmatpush3.msra.mxu0 %v353_v17  ;;  %2688 = vmatpush3.msra.mxu1 %v369_v18  ;;  %v399_v55 = vld [vmem:[%s4353_s2 + $0x1a8] sm:$0xff]  ;;  %v382_v56 = vld [vmem:[%s4353_s2 + $0x120] sm:$0xff]  ;;  %v381_v58 = vld [vmem:[%s4353_s2 + $0x118] sm:$0xff] }
  0x27   : > { %2654 = vmatprep.subr.mxu0 %v3261_v2  ;;  %2689 = vmatprep.subr.mxu1 %v3261_v2  ;;  %v398_v57 = vld [vmem:[%s4353_s2 + $0x1a0] sm:$0xff]  ;;  %v397_v59 = vld [vmem:[%s4353_s2 + $0x198] sm:$0xff]  ;;  %v380_v60 = vld [vmem:[%s4353_s2 + $0x110] sm:$0xff] }
  0x28   : > { %2655 = vmatpush3.msra.mxu0 %v352_v19  ;;  %2690 = vmatpush3.msra.mxu1 %v368_v20  ;;  %v396_v61 = vld [vmem:[%s4353_s2 + $0x190] sm:$0xff]  ;;  %v379_v62 = vld [vmem:[%s4353_s2 + $0x108] sm:$0xff]  ;;  %v378_v0 = vld [vmem:[%s4353_s2 + $0x100] sm:$0xff] }
  0x29   : > { %2656 = vmatprep.subr.mxu0 %v3261_v2  ;;  %2691 = vmatprep.subr.mxu1 %v3261_v2  ;;  %v395_v63 = vld [vmem:[%s4353_s2 + $0x188] sm:$0xff]  ;;  %v394_v1 = vld [vmem:[%s4353_s2 + $0x180] sm:$0xff]  ;;  %v747_v3 = vld [vmem:[%s4355_s4 + $0x78] sm:$0xff] }
  0x2a   : > { %2657 = vmatpush3.msra.mxu0 %v351_v21  ;;  %2692 = vmatpush3.msra.mxu1 %v367_v22  ;;  %v763_v4 = vld [vmem:[%s4355_s4 + $0xf8] sm:$0xff]  ;;  %v746_v5 = vld [vmem:[%s4355_s4 + $0x70] sm:$0xff]  ;;  %v745_v7 = vld [vmem:[%s4355_s4 + $0x68] sm:$0xff] }
  0x2b   : > { %2658 = vmatprep.subr.mxu0 %v3261_v2  ;;  %2693 = vmatprep.subr.mxu1 %v3261_v2  ;;  %v762_v6 = vld [vmem:[%s4355_s4 + $0xf0] sm:$0xff]  ;;  %v761_v8 = vld [vmem:[%s4355_s4 + $0xe8] sm:$0xff]  ;;  %v744_v9 = vld [vmem:[%s4355_s4 + $0x60] sm:$0xff] }
  0x2c   : > { %2659 = vmatpush3.msra.mxu0 %v350_v23  ;;  %2694 = vmatpush3.msra.mxu1 %v366_v24  ;;  %v760_v10 = vld [vmem:[%s4355_s4 + $0xe0] sm:$0xff]  ;;  %v743_v11 = vld [vmem:[%s4355_s4 + $0x58] sm:$0xff]  ;;  %v742_v13 = vld [vmem:[%s4355_s4 + $0x50] sm:$0xff] }
  0x2d   : > { %2660 = vmatprep.subr.mxu0 %v3261_v2  ;;  %2695 = vmatprep.subr.mxu1 %v3261_v2  ;;  %v759_v12 = vld [vmem:[%s4355_s4 + $0xd8] sm:$0xff]  ;;  %v758_v14 = vld [vmem:[%s4355_s4 + $0xd0] sm:$0xff]  ;;  %v741_v15 = vld [vmem:[%s4355_s4 + $0x48] sm:$0xff] }
  0x2e   : > { %2661 = vmatpush3.msra.mxu0 %v349_v25  ;;  %2696 = vmatpush3.msra.mxu1 %v365_v26  ;;  %v757_v16 = vld [vmem:[%s4355_s4 + $0xc8] sm:$0xff]  ;;  %v740_v17 = vld [vmem:[%s4355_s4 + $0x40] sm:$0xff]  ;;  %v739_v19 = vld [vmem:[%s4355_s4 + $0x38] sm:$0xff] }
  0x2f   : > { %2662 = vmatprep.subr.mxu0 %v3261_v2  ;;  %2697 = vmatprep.subr.mxu1 %v3261_v2  ;;  %v756_v18 = vld [vmem:[%s4355_s4 + $0xc0] sm:$0xff]  ;;  %v755_v20 = vld [vmem:[%s4355_s4 + $0xb8] sm:$0xff]  ;;  %v738_v21 = vld [vmem:[%s4355_s4 + $0x30] sm:$0xff] }
  0x30   : > { %2663 = vmatpush3.msra.mxu0 %v348_v27  ;;  %2698 = vmatpush3.msra.mxu1 %v364_v28  ;;  %v754_v22 = vld [vmem:[%s4355_s4 + $0xb0] sm:$0xff]  ;;  %v737_v23 = vld [vmem:[%s4355_s4 + $0x28] sm:$0xff]  ;;  %v736_v25 = vld [vmem:[%s4355_s4 + $0x20] sm:$0xff] }
  0x31   : > { %2664 = vmatprep.subr.mxu0 %v3261_v2  ;;  %2699 = vmatprep.subr.mxu1 %v3261_v2  ;;  %v753_v24 = vld [vmem:[%s4355_s4 + $0xa8] sm:$0xff]  ;;  %v752_v26 = vld [vmem:[%s4355_s4 + $0xa0] sm:$0xff]  ;;  %v735_v27 = vld [vmem:[%s4355_s4 + $0x18] sm:$0xff] }
  0x32   : > { %2665 = vmatpush3.msra.mxu0 %v347_v29  ;;  %2700 = vmatpush3.msra.mxu1 %v363_v30  ;;  %v751_v28 = vld [vmem:[%s4355_s4 + $0x98] sm:$0xff]  ;;  %v734_v29 = vld [vmem:[%s4355_s4 + $0x10] sm:$0xff] }
  0x33   : > { %2666 = vmatprep.subr.mxu0 %v3261_v2  ;;  %2701 = vmatprep.subr.mxu1 %v3261_v2  ;;  %v750_v30 = vld [vmem:[%s4355_s4 + $0x90] sm:$0xff] }
  0x34   : > { %2667 = vmatpush3.msra.mxu0 %v346_v31  ;;  %2668 = vmatprep.mubr.msk.f32.mxu0 %vm3262_vm0, %v3261_v2  ;;  %v733_v31 = vld [vmem:[%s4355_s4 + $0x8] sm:$0xff] }
  0x35   : > { %2702 = vmatpush3.msra.mxu1 %v362_v32  ;;  %2703 = vmatprep.mubr.msk.f32.mxu1 %vm3262_vm0, %v3261_v2  ;;  %v749_v32 = vld [vmem:[%s4355_s4 + $0x88] sm:$0xff] }
  0x36   : > { %2669 = vmatmul.mubr.f32.vlgmr.msra.gmra.mxu0 %v3505_v33  ;;  %2704 = vmatmul.mubr.f32.vlgmr.msra.gmra.mxu1 %v3505_v33 }
  0x37   : > { %2706 = vmatprep.subr.mxu0 %v3261_v2  ;;  %2741 = vmatprep.subr.mxu1 %v3261_v2 }
  0x38   : > { %2707 = vmatpush3.msra.mxu0 %v393_v34  ;;  %2742 = vmatpush3.msra.mxu1 %v409_v35  ;;  %v748_v34 = vld [vmem:[%s4355_s4 + $0x80] sm:$0xff] }
  0x39   : > { %2708 = vmatprep.subr.mxu0 %v3261_v2  ;;  %2743 = vmatprep.subr.mxu1 %v3261_v2  ;;  %v3778_v35 = vld [vmem:[%s340_s25] sm:$0xff] }
  0x3a   : > { %2709 = vmatpush3.msra.mxu0 %v392_v36  ;;  %2744 = vmatpush3.msra.mxu1 %v408_v37  ;;  %v779_v36 = vld [vmem:[%s4355_s4 + $0x178] sm:$0xff] }
  0x3b   : > { %2710 = vmatprep.subr.mxu0 %v3261_v2  ;;  %2745 = vmatprep.subr.mxu1 %v3261_v2  ;;  %v795_v37 = vld [vmem:[%s4355_s4 + $0x1f8] sm:$0xff] }
  0x3c   : > { %2711 = vmatpush3.msra.mxu0 %v391_v38  ;;  %2746 = vmatpush3.msra.mxu1 %v407_v39  ;;  %v778_v38 = vld [vmem:[%s4355_s4 + $0x170] sm:$0xff] }
  0x3d   : > { %2712 = vmatprep.subr.mxu0 %v3261_v2  ;;  %2747 = vmatprep.subr.mxu1 %v3261_v2  ;;  %v794_v39 = vld [vmem:[%s4355_s4 + $0x1f0] sm:$0xff] }
  0x3e   : > { %2713 = vmatpush3.msra.mxu0 %v390_v40  ;;  %2748 = vmatpush3.msra.mxu1 %v406_v41  ;;  %v777_v40 = vld [vmem:[%s4355_s4 + $0x168] sm:$0xff] }
  0x3f   : > { %2714 = vmatprep.subr.mxu0 %v3261_v2  ;;  %2749 = vmatprep.subr.mxu1 %v3261_v2  ;;  %v793_v41 = vld [vmem:[%s4355_s4 + $0x1e8] sm:$0xff] }
  0x40   : > { %2715 = vmatpush3.msra.mxu0 %v389_v42  ;;  %2750 = vmatpush3.msra.mxu1 %v405_v43  ;;  %v776_v42 = vld [vmem:[%s4355_s4 + $0x160] sm:$0xff] }
  0x41   : > { %2716 = vmatprep.subr.mxu0 %v3261_v2  ;;  %2751 = vmatprep.subr.mxu1 %v3261_v2  ;;  %v792_v43 = vld [vmem:[%s4355_s4 + $0x1e0] sm:$0xff] }
  0x42   : > { %2717 = vmatpush3.msra.mxu0 %v388_v44  ;;  %2752 = vmatpush3.msra.mxu1 %v404_v45  ;;  %v775_v44 = vld [vmem:[%s4355_s4 + $0x158] sm:$0xff] }
  0x43   : > { %2718 = vmatprep.subr.mxu0 %v3261_v2  ;;  %2753 = vmatprep.subr.mxu1 %v3261_v2  ;;  %v791_v45 = vld [vmem:[%s4355_s4 + $0x1d8] sm:$0xff] }
  0x44   : > { %2719 = vmatpush3.msra.mxu0 %v387_v46  ;;  %2754 = vmatpush3.msra.mxu1 %v403_v47  ;;  %v774_v46 = vld [vmem:[%s4355_s4 + $0x150] sm:$0xff] }
  0x45   : > { %2720 = vmatprep.subr.mxu0 %v3261_v2  ;;  %2755 = vmatprep.subr.mxu1 %v3261_v2  ;;  %v790_v47 = vld [vmem:[%s4355_s4 + $0x1d0] sm:$0xff] }
  0x46   : > { %2721 = vmatpush3.msra.mxu0 %v386_v48  ;;  %2756 = vmatpush3.msra.mxu1 %v402_v49  ;;  %v773_v48 = vld [vmem:[%s4355_s4 + $0x148] sm:$0xff] }
  0x47   : > { %2722 = vmatprep.subr.mxu0 %v3261_v2  ;;  %2757 = vmatprep.subr.mxu1 %v3261_v2  ;;  %v789_v49 = vld [vmem:[%s4355_s4 + $0x1c8] sm:$0xff] }
  0x48   : > { %2723 = vmatpush3.msra.mxu0 %v385_v50  ;;  %2758 = vmatpush3.msra.mxu1 %v401_v51  ;;  %v772_v50 = vld [vmem:[%s4355_s4 + $0x140] sm:$0xff] }
  0x49   : > { %2724 = vmatprep.subr.mxu0 %v3261_v2  ;;  %2759 = vmatprep.subr.mxu1 %v3261_v2  ;;  %v788_v51 = vld [vmem:[%s4355_s4 + $0x1c0] sm:$0xff] }
  0x4a   : > { %2725 = vmatpush3.msra.mxu0 %v384_v52  ;;  %2760 = vmatpush3.msra.mxu1 %v400_v53  ;;  %v771_v52 = vld [vmem:[%s4355_s4 + $0x138] sm:$0xff] }
  0x4b   : > { %2726 = vmatprep.subr.mxu0 %v3261_v2  ;;  %2761 = vmatprep.subr.mxu1 %v3261_v2  ;;  %v787_v53 = vld [vmem:[%s4355_s4 + $0x1b8] sm:$0xff] }
  0x4c   : > { %2727 = vmatpush3.msra.mxu0 %v383_v54  ;;  %2762 = vmatpush3.msra.mxu1 %v399_v55  ;;  %v770_v54 = vld [vmem:[%s4355_s4 + $0x130] sm:$0xff] }
  0x4d   : > { %2728 = vmatprep.subr.mxu0 %v3261_v2  ;;  %2763 = vmatprep.subr.mxu1 %v3261_v2  ;;  %v786_v55 = vld [vmem:[%s4355_s4 + $0x1b0] sm:$0xff] }
  0x4e   : > { %2729 = vmatpush3.msra.mxu0 %v382_v56  ;;  %2764 = vmatpush3.msra.mxu1 %v398_v57  ;;  %v769_v56 = vld [vmem:[%s4355_s4 + $0x128] sm:$0xff] }
  0x4f   : > { %2730 = vmatprep.subr.mxu0 %v3261_v2  ;;  %2765 = vmatprep.subr.mxu1 %v3261_v2  ;;  %v785_v57 = vld [vmem:[%s4355_s4 + $0x1a8] sm:$0xff] }
  0x50   : > { %2731 = vmatpush3.msra.mxu0 %v381_v58  ;;  %2766 = vmatpush3.msra.mxu1 %v397_v59  ;;  %v768_v58 = vld [vmem:[%s4355_s4 + $0x120] sm:$0xff] }
  0x51   : > { %2732 = vmatprep.subr.mxu0 %v3261_v2  ;;  %2767 = vmatprep.subr.mxu1 %v3261_v2  ;;  %v784_v59 = vld [vmem:[%s4355_s4 + $0x1a0] sm:$0xff] }
  0x52   : > { %2733 = vmatpush3.msra.mxu0 %v380_v60  ;;  %2768 = vmatpush3.msra.mxu1 %v396_v61  ;;  %v767_v60 = vld [vmem:[%s4355_s4 + $0x118] sm:$0xff] }
  0x53   : > { %2734 = vmatprep.subr.mxu0 %v3261_v2  ;;  %2769 = vmatprep.subr.mxu1 %v3261_v2  ;;  %v783_v61 = vld [vmem:[%s4355_s4 + $0x198] sm:$0xff] }
  0x54   : > { %2735 = vmatpush3.msra.mxu0 %v379_v62  ;;  %2770 = vmatpush3.msra.mxu1 %v395_v63  ;;  %v766_v62 = vld [vmem:[%s4355_s4 + $0x110] sm:$0xff] }
  0x55   : > { %2736 = vmatprep.subr.mxu0 %v3261_v2  ;;  %2771 = vmatprep.subr.mxu1 %v3261_v2  ;;  %v782_v63 = vld [vmem:[%s4355_s4 + $0x190] sm:$0xff] }
  0x56   : > { %2737 = vmatpush3.msra.mxu0 %v378_v0  ;;  %2738 = vmatprep.mubr.msk.f32.mxu0 %vm3262_vm0, %v3261_v2  ;;  %v765_v0 = vld [vmem:[%s4355_s4 + $0x108] sm:$0xff] }
  0x57   : > { %2772 = vmatpush3.msra.mxu1 %v394_v1  ;;  %2773 = vmatprep.mubr.msk.f32.mxu1 %vm3262_vm0, %v3261_v2  ;;  %v781_v1 = vld [vmem:[%s4355_s4 + $0x188] sm:$0xff] }
  0x58   : > { %2739 = vmatmul.mubr.f32.vlgmr.msra.gmra.mxu0 %v3505_v33  ;;  %2774 = vmatmul.mubr.f32.vlgmr.msra.gmra.mxu1 %v3505_v33  ;;  %v732_v33 = vld [vmem:[%s4355_s4] sm:$0xff] }
  0x59   : > { %2776 = vmatprep.subr.mxu0 %v3261_v2  ;;  %2811 = vmatprep.subr.mxu1 %v3261_v2 }
  0x5a   : > { %2777 = vmatpush3.msra.mxu0 %v747_v3  ;;  %2812 = vmatpush3.msra.mxu1 %v763_v4  ;;  %v764_v3 = vld [vmem:[%s4355_s4 + $0x100] sm:$0xff] }
  0x5b   : > { %2778 = vmatprep.subr.mxu0 %v3261_v2  ;;  %2813 = vmatprep.subr.mxu1 %v3261_v2  ;;  %v780_v4 = vld [vmem:[%s4355_s4 + $0x180] sm:$0xff] }
  0x5c   : > { %2779 = vmatpush3.msra.mxu0 %v746_v5  ;;  %2814 = vmatpush3.msra.mxu1 %v762_v6  ;;  %v827_v5 = vld [vmem:[%s4355_s4 + $0x2f8] sm:$0xff] }
  0x5d   : > { %2780 = vmatprep.subr.mxu0 %v3261_v2  ;;  %2815 = vmatprep.subr.mxu1 %v3261_v2  ;;  %v811_v6 = vld [vmem:[%s4355_s4 + $0x278] sm:$0xff] }
  0x5e   : > { %2781 = vmatpush3.msra.mxu0 %v745_v7  ;;  %2816 = vmatpush3.msra.mxu1 %v761_v8  ;;  %v826_v7 = vld [vmem:[%s4355_s4 + $0x2f0] sm:$0xff] }
  0x5f   : > { %2782 = vmatprep.subr.mxu0 %v3261_v2  ;;  %2817 = vmatprep.subr.mxu1 %v3261_v2  ;;  %v810_v8 = vld [vmem:[%s4355_s4 + $0x270] sm:$0xff] }
  0x60   : > { %2783 = vmatpush3.msra.mxu0 %v744_v9  ;;  %2818 = vmatpush3.msra.mxu1 %v760_v10  ;;  %v825_v9 = vld [vmem:[%s4355_s4 + $0x2e8] sm:$0xff] }
  0x61   : > { %2784 = vmatprep.subr.mxu0 %v3261_v2  ;;  %2819 = vmatprep.subr.mxu1 %v3261_v2  ;;  %v809_v10 = vld [vmem:[%s4355_s4 + $0x268] sm:$0xff] }
  0x62   : > { %2785 = vmatpush3.msra.mxu0 %v743_v11  ;;  %2820 = vmatpush3.msra.mxu1 %v759_v12  ;;  %v824_v11 = vld [vmem:[%s4355_s4 + $0x2e0] sm:$0xff] }
  0x63   : > { %2786 = vmatprep.subr.mxu0 %v3261_v2  ;;  %2821 = vmatprep.subr.mxu1 %v3261_v2  ;;  %v808_v12 = vld [vmem:[%s4355_s4 + $0x260] sm:$0xff] }
  0x64   : > { %2787 = vmatpush3.msra.mxu0 %v742_v13  ;;  %2822 = vmatpush3.msra.mxu1 %v758_v14  ;;  %v823_v13 = vld [vmem:[%s4355_s4 + $0x2d8] sm:$0xff] }
  0x65   : > { %2788 = vmatprep.subr.mxu0 %v3261_v2  ;;  %2823 = vmatprep.subr.mxu1 %v3261_v2  ;;  %v807_v14 = vld [vmem:[%s4355_s4 + $0x258] sm:$0xff] }
  0x66   : > { %2789 = vmatpush3.msra.mxu0 %v741_v15  ;;  %2824 = vmatpush3.msra.mxu1 %v757_v16  ;;  %v822_v15 = vld [vmem:[%s4355_s4 + $0x2d0] sm:$0xff] }
  0x67   : > { %2790 = vmatprep.subr.mxu0 %v3261_v2  ;;  %2825 = vmatprep.subr.mxu1 %v3261_v2  ;;  %v806_v16 = vld [vmem:[%s4355_s4 + $0x250] sm:$0xff] }
  0x68   : > { %2791 = vmatpush3.msra.mxu0 %v740_v17  ;;  %2826 = vmatpush3.msra.mxu1 %v756_v18  ;;  %v821_v17 = vld [vmem:[%s4355_s4 + $0x2c8] sm:$0xff] }
  0x69   : > { %2792 = vmatprep.subr.mxu0 %v3261_v2  ;;  %2827 = vmatprep.subr.mxu1 %v3261_v2  ;;  %v805_v18 = vld [vmem:[%s4355_s4 + $0x248] sm:$0xff] }
  0x6a   : > { %2793 = vmatpush3.msra.mxu0 %v739_v19  ;;  %2828 = vmatpush3.msra.mxu1 %v755_v20  ;;  %v820_v19 = vld [vmem:[%s4355_s4 + $0x2c0] sm:$0xff] }
  0x6b   : > { %2794 = vmatprep.subr.mxu0 %v3261_v2  ;;  %2829 = vmatprep.subr.mxu1 %v3261_v2  ;;  %v804_v20 = vld [vmem:[%s4355_s4 + $0x240] sm:$0xff] }
  0x6c   : > { %2795 = vmatpush3.msra.mxu0 %v738_v21  ;;  %2830 = vmatpush3.msra.mxu1 %v754_v22  ;;  %v819_v21 = vld [vmem:[%s4355_s4 + $0x2b8] sm:$0xff] }
  0x6d   : > { %2796 = vmatprep.subr.mxu0 %v3261_v2  ;;  %2831 = vmatprep.subr.mxu1 %v3261_v2  ;;  %v803_v22 = vld [vmem:[%s4355_s4 + $0x238] sm:$0xff] }
  0x6e   : > { %2797 = vmatpush3.msra.mxu0 %v737_v23  ;;  %2832 = vmatpush3.msra.mxu1 %v753_v24  ;;  %v818_v23 = vld [vmem:[%s4355_s4 + $0x2b0] sm:$0xff] }
  0x6f   : > { %2798 = vmatprep.subr.mxu0 %v3261_v2  ;;  %2833 = vmatprep.subr.mxu1 %v3261_v2  ;;  %v802_v24 = vld [vmem:[%s4355_s4 + $0x230] sm:$0xff] }
  0x70   : > { %2799 = vmatpush3.msra.mxu0 %v736_v25  ;;  %2834 = vmatpush3.msra.mxu1 %v752_v26  ;;  %v817_v25 = vld [vmem:[%s4355_s4 + $0x2a8] sm:$0xff] }
  0x71   : > { %2800 = vmatprep.subr.mxu0 %v3261_v2  ;;  %2835 = vmatprep.subr.mxu1 %v3261_v2  ;;  %v801_v26 = vld [vmem:[%s4355_s4 + $0x228] sm:$0xff] }
  0x72   : > { %2801 = vmatpush3.msra.mxu0 %v735_v27  ;;  %2836 = vmatpush3.msra.mxu1 %v751_v28  ;;  %v816_v27 = vld [vmem:[%s4355_s4 + $0x2a0] sm:$0xff] }
  0x73   : > { %2802 = vmatprep.subr.mxu0 %v3261_v2  ;;  %2837 = vmatprep.subr.mxu1 %v3261_v2  ;;  %v800_v28 = vld [vmem:[%s4355_s4 + $0x220] sm:$0xff] }
  0x74   : > { %2803 = vmatpush3.msra.mxu0 %v734_v29  ;;  %2838 = vmatpush3.msra.mxu1 %v750_v30  ;;  %v815_v29 = vld [vmem:[%s4355_s4 + $0x298] sm:$0xff] }
  0x75   : > { %2804 = vmatprep.subr.mxu0 %v3261_v2  ;;  %2839 = vmatprep.subr.mxu1 %v3261_v2  ;;  %v799_v30 = vld [vmem:[%s4355_s4 + $0x218] sm:$0xff] }
  0x76   : > { %2805 = vmatpush3.msra.mxu0 %v733_v31  ;;  %2840 = vmatpush3.msra.mxu1 %v749_v32  ;;  %v814_v31 = vld [vmem:[%s4355_s4 + $0x290] sm:$0xff] }
  0x77   : > { %2806 = vmatprep.subr.mxu0 %v3261_v2  ;;  %2841 = vmatprep.subr.mxu1 %v3261_v2  ;;  %v798_v32 = vld [vmem:[%s4355_s4 + $0x210] sm:$0xff] }
  0x78   : > { %2807 = vmatpush3.msra.mxu0 %v732_v33  ;;  %2808 = vmatprep.mubr.msk.f32.mxu0 %vm3262_vm0, %v3261_v2  ;;  %v813_v33 = vld [vmem:[%s4355_s4 + $0x288] sm:$0xff] }
  0x79   : > { %2842 = vmatpush3.msra.mxu1 %v748_v34  ;;  %2843 = vmatprep.mubr.msk.f32.mxu1 %vm3262_vm0, %v3261_v2  ;;  %v797_v34 = vld [vmem:[%s4355_s4 + $0x208] sm:$0xff] }
  0x7a   : > { %2809 = vmatmul.mubr.f32.vlgmr.msra.gmra.mxu0 %v3778_v35  ;;  %2844 = vmatmul.mubr.f32.vlgmr.msra.gmra.mxu1 %v3778_v35 }
  0x7b   : > { %2846 = vmatprep.subr.mxu0 %v3261_v2  ;;  %2881 = vmatprep.subr.mxu1 %v3261_v2 }
  0x7c   : > { %2847 = vmatpush3.msra.mxu0 %v779_v36  ;;  %2882 = vmatpush3.msra.mxu1 %v795_v37  ;;  %v812_v36 = vld [vmem:[%s4355_s4 + $0x280] sm:$0xff]  ;;  %v859_v37 = vld [vmem:[%s4355_s4 + $0x3f8] sm:$0xff] }
  0x7d   : > { %2848 = vmatprep.subr.mxu0 %v3261_v2  ;;  %2883 = vmatprep.subr.mxu1 %v3261_v2 }
  0x7e   : > { %2849 = vmatpush3.msra.mxu0 %v778_v38  ;;  %2884 = vmatpush3.msra.mxu1 %v794_v39  ;;  %v796_v38 = vld [vmem:[%s4355_s4 + $0x200] sm:$0xff]  ;;  %v858_v39 = vld [vmem:[%s4355_s4 + $0x3f0] sm:$0xff] }
  0x7f   : > { %2850 = vmatprep.subr.mxu0 %v3261_v2  ;;  %2885 = vmatprep.subr.mxu1 %v3261_v2 }
  0x80   : > { %2851 = vmatpush3.msra.mxu0 %v777_v40  ;;  %2886 = vmatpush3.msra.mxu1 %v793_v41  ;;  %v857_v40 = vld [vmem:[%s4355_s4 + $0x3e8] sm:$0xff]  ;;  %v843_v41 = vld [vmem:[%s4355_s4 + $0x378] sm:$0xff] }
  0x81   : > { %2852 = vmatprep.subr.mxu0 %v3261_v2  ;;  %2887 = vmatprep.subr.mxu1 %v3261_v2 }
  0x82   : > { %2853 = vmatpush3.msra.mxu0 %v776_v42  ;;  %2888 = vmatpush3.msra.mxu1 %v792_v43  ;;  %v856_v42 = vld [vmem:[%s4355_s4 + $0x3e0] sm:$0xff]  ;;  %v842_v43 = vld [vmem:[%s4355_s4 + $0x370] sm:$0xff] }
  0x83   : > { %2854 = vmatprep.subr.mxu0 %v3261_v2  ;;  %2889 = vmatprep.subr.mxu1 %v3261_v2 }
  0x84   : > { %2855 = vmatpush3.msra.mxu0 %v775_v44  ;;  %2890 = vmatpush3.msra.mxu1 %v791_v45  ;;  %v855_v44 = vld [vmem:[%s4355_s4 + $0x3d8] sm:$0xff]  ;;  %v841_v45 = vld [vmem:[%s4355_s4 + $0x368] sm:$0xff] }
  0x85   : > { %2856 = vmatprep.subr.mxu0 %v3261_v2  ;;  %2891 = vmatprep.subr.mxu1 %v3261_v2 }
  0x86   : > { %2857 = vmatpush3.msra.mxu0 %v774_v46  ;;  %2892 = vmatpush3.msra.mxu1 %v790_v47  ;;  %v854_v46 = vld [vmem:[%s4355_s4 + $0x3d0] sm:$0xff]  ;;  %v840_v47 = vld [vmem:[%s4355_s4 + $0x360] sm:$0xff] }
  0x87   : > { %2858 = vmatprep.subr.mxu0 %v3261_v2  ;;  %2893 = vmatprep.subr.mxu1 %v3261_v2 }
  0x88   : > { %2859 = vmatpush3.msra.mxu0 %v773_v48  ;;  %2894 = vmatpush3.msra.mxu1 %v789_v49  ;;  %v853_v48 = vld [vmem:[%s4355_s4 + $0x3c8] sm:$0xff]  ;;  %v839_v49 = vld [vmem:[%s4355_s4 + $0x358] sm:$0xff] }
  0x89   : > { %2860 = vmatprep.subr.mxu0 %v3261_v2  ;;  %2895 = vmatprep.subr.mxu1 %v3261_v2 }
  0x8a   : > { %2861 = vmatpush3.msra.mxu0 %v772_v50  ;;  %2896 = vmatpush3.msra.mxu1 %v788_v51  ;;  %v852_v50 = vld [vmem:[%s4355_s4 + $0x3c0] sm:$0xff]  ;;  %v838_v51 = vld [vmem:[%s4355_s4 + $0x350] sm:$0xff] }
  0x8b   : > { %2862 = vmatprep.subr.mxu0 %v3261_v2  ;;  %2897 = vmatprep.subr.mxu1 %v3261_v2 }
  0x8c   : > { %2863 = vmatpush3.msra.mxu0 %v771_v52  ;;  %2898 = vmatpush3.msra.mxu1 %v787_v53  ;;  %v851_v52 = vld [vmem:[%s4355_s4 + $0x3b8] sm:$0xff]  ;;  %v837_v53 = vld [vmem:[%s4355_s4 + $0x348] sm:$0xff] }
  0x8d   : > { %2864 = vmatprep.subr.mxu0 %v3261_v2  ;;  %2899 = vmatprep.subr.mxu1 %v3261_v2 }
  0x8e   : > { %2865 = vmatpush3.msra.mxu0 %v770_v54  ;;  %2900 = vmatpush3.msra.mxu1 %v786_v55  ;;  %v850_v54 = vld [vmem:[%s4355_s4 + $0x3b0] sm:$0xff]  ;;  %v836_v55 = vld [vmem:[%s4355_s4 + $0x340] sm:$0xff] }
  0x8f   : > { %2866 = vmatprep.subr.mxu0 %v3261_v2  ;;  %2901 = vmatprep.subr.mxu1 %v3261_v2 }
  0x90   : > { %2867 = vmatpush3.msra.mxu0 %v769_v56  ;;  %2902 = vmatpush3.msra.mxu1 %v785_v57  ;;  %v849_v56 = vld [vmem:[%s4355_s4 + $0x3a8] sm:$0xff]  ;;  %v835_v57 = vld [vmem:[%s4355_s4 + $0x338] sm:$0xff] }
  0x91   : > { %2868 = vmatprep.subr.mxu0 %v3261_v2  ;;  %2903 = vmatprep.subr.mxu1 %v3261_v2 }
  0x92   : > { %2869 = vmatpush3.msra.mxu0 %v768_v58  ;;  %2904 = vmatpush3.msra.mxu1 %v784_v59  ;;  %v848_v58 = vld [vmem:[%s4355_s4 + $0x3a0] sm:$0xff]  ;;  %v834_v59 = vld [vmem:[%s4355_s4 + $0x330] sm:$0xff] }
  0x93   : > { %2870 = vmatprep.subr.mxu0 %v3261_v2  ;;  %2905 = vmatprep.subr.mxu1 %v3261_v2 }
  0x94   : > { %2871 = vmatpush3.msra.mxu0 %v767_v60  ;;  %2906 = vmatpush3.msra.mxu1 %v783_v61  ;;  %v847_v60 = vld [vmem:[%s4355_s4 + $0x398] sm:$0xff]  ;;  %v833_v61 = vld [vmem:[%s4355_s4 + $0x328] sm:$0xff] }
  0x95   : > { %2872 = vmatprep.subr.mxu0 %v3261_v2  ;;  %2907 = vmatprep.subr.mxu1 %v3261_v2 }
  0x96   : > { %2873 = vmatpush3.msra.mxu0 %v766_v62  ;;  %2908 = vmatpush3.msra.mxu1 %v782_v63  ;;  %v846_v62 = vld [vmem:[%s4355_s4 + $0x390] sm:$0xff]  ;;  %v832_v63 = vld [vmem:[%s4355_s4 + $0x320] sm:$0xff] }
  0x97   : > { %2874 = vmatprep.subr.mxu0 %v3261_v2  ;;  %2909 = vmatprep.subr.mxu1 %v3261_v2 }
  0x98   : > { %2875 = vmatpush3.msra.mxu0 %v765_v0  ;;  %2910 = vmatpush3.msra.mxu1 %v781_v1  ;;  %v845_v0 = vld [vmem:[%s4355_s4 + $0x388] sm:$0xff]  ;;  %v831_v1 = vld [vmem:[%s4355_s4 + $0x318] sm:$0xff] }
  0x99   : > { %2876 = vmatprep.subr.mxu0 %v3261_v2  ;;  %2911 = vmatprep.subr.mxu1 %v3261_v2 }
  0x9a   : > { %2877 = vmatpush3.msra.mxu0 %v764_v3  ;;  %2878 = vmatprep.mubr.msk.f32.mxu0 %vm3262_vm0, %v3261_v2  ;;  %v844_v3 = vld [vmem:[%s4355_s4 + $0x380] sm:$0xff] }
  0x9b   : > { %2912 = vmatpush3.msra.mxu1 %v780_v4  ;;  %2913 = vmatprep.mubr.msk.f32.mxu1 %vm3262_vm0, %v3261_v2  ;;  %v830_v4 = vld [vmem:[%s4355_s4 + $0x310] sm:$0xff] }
  0x9c   : > { %2879 = vmatmul.mubr.f32.vlgmr.msra.gmra.mxu0 %v3778_v35  ;;  %2914 = vmatmul.mubr.f32.vlgmr.msra.gmra.mxu1 %v3778_v35 }
  0x9d   : > { %2951 = vmatprep.subr.mxu1 %v3261_v2  ;;  %2916 = vmatprep.subr.mxu0 %v3261_v2 }
  0x9e   : > { %2952 = vmatpush3.msra.mxu1 %v827_v5  ;;  %2917 = vmatpush3.msra.mxu0 %v811_v6  ;;  %v829_v5 = vld [vmem:[%s4355_s4 + $0x308] sm:$0xff]  ;;  %v828_v6 = vld [vmem:[%s4355_s4 + $0x300] sm:$0xff] }
  0x9f   : > { %2953 = vmatprep.subr.mxu1 %v3261_v2  ;;  %2983 = vmatprep.mubr.msk.f32.mxu1 %vm3262_vm0, %v3261_v2 }
  0xa0   : > { %2954 = vmatpush3.msra.mxu1 %v826_v7  ;;  %2918 = vmatprep.subr.mxu0 %v3261_v2  ;;  %v2381_v7 = vld [vmem:[%s4354_s3] ss:$0 sm:$0xff] }
  0xa1   : > { %2955 = vmatprep.subr.mxu1 %v3261_v2  ;;  %2919 = vmatpush3.msra.mxu0 %v810_v8  ;;  %v2382_v8 = vld [vmem:[%s4354_s3 + $0x1] ss:$0 sm:$0xff] }
  0xa2   : > { %2956 = vmatpush3.msra.mxu1 %v825_v9  ;;  %2920 = vmatprep.subr.mxu0 %v3261_v2 }
  0xa3   : > { %2957 = vmatprep.subr.mxu1 %v3261_v2  ;;  %2921 = vmatpush3.msra.mxu0 %v809_v10 }
  0xa4   : > { %2958 = vmatpush3.msra.mxu1 %v824_v11  ;;  %2922 = vmatprep.subr.mxu0 %v3261_v2 }
  0xa5   : > { %2959 = vmatprep.subr.mxu1 %v3261_v2  ;;  %2923 = vmatpush3.msra.mxu0 %v808_v12 }
  0xa6   : > { %2960 = vmatpush3.msra.mxu1 %v823_v13  ;;  %2924 = vmatprep.subr.mxu0 %v3261_v2 }
  0xa7   : > { %2961 = vmatprep.subr.mxu1 %v3261_v2  ;;  %2925 = vmatpush3.msra.mxu0 %v807_v14 }
  0xa8   : > { %2962 = vmatpush3.msra.mxu1 %v822_v15  ;;  %2926 = vmatprep.subr.mxu0 %v3261_v2 }
  0xa9   : > { %2963 = vmatprep.subr.mxu1 %v3261_v2  ;;  %2927 = vmatpush3.msra.mxu0 %v806_v16  ;;  %v2383_v16 = vld [vmem:[%s4354_s3 + $0x2] ss:$0 sm:$0xff] }
  0xaa   : > { %2964 = vmatpush3.msra.mxu1 %v821_v17  ;;  %2928 = vmatprep.subr.mxu0 %v3261_v2  ;;  %v2384_v17 = vld [vmem:[%s4354_s3 + $0x3] ss:$0 sm:$0xff] }
  0xab   : > { %2965 = vmatprep.subr.mxu1 %v3261_v2  ;;  %2929 = vmatpush3.msra.mxu0 %v805_v18 }
  0xac   : > { %2966 = vmatpush3.msra.mxu1 %v820_v19  ;;  %2930 = vmatprep.subr.mxu0 %v3261_v2 }
  0xad   : > { %2967 = vmatprep.subr.mxu1 %v3261_v2  ;;  %2931 = vmatpush3.msra.mxu0 %v804_v20 }
  0xae   : > { %2968 = vmatpush3.msra.mxu1 %v819_v21  ;;  %2932 = vmatprep.subr.mxu0 %v3261_v2 }
  0xaf   : > { %2969 = vmatprep.subr.mxu1 %v3261_v2  ;;  %2933 = vmatpush3.msra.mxu0 %v803_v22 }
  0xb0   : > { %2970 = vmatpush3.msra.mxu1 %v818_v23  ;;  %2934 = vmatprep.subr.mxu0 %v3261_v2 }
  0xb1   : > { %2971 = vmatprep.subr.mxu1 %v3261_v2  ;;  %2935 = vmatpush3.msra.mxu0 %v802_v24 }
  0xb2   : > { %2972 = vmatpush3.msra.mxu1 %v817_v25  ;;  %2936 = vmatprep.subr.mxu0 %v3261_v2 }
  0xb3   : > { %2973 = vmatprep.subr.mxu1 %v3261_v2  ;;  %2937 = vmatpush3.msra.mxu0 %v801_v26  ;;  %v2385_v26 = vld [vmem:[%s4356_s5] ss:$0 sm:$0xff] }
  0xb4   : > { %2974 = vmatpush3.msra.mxu1 %v816_v27  ;;  %2938 = vmatprep.subr.mxu0 %v3261_v2 }
  0xb5   : > { %2975 = vmatprep.subr.mxu1 %v3261_v2  ;;  %2939 = vmatpush3.msra.mxu0 %v800_v28 }
  0xb6   : > { %2976 = vmatpush3.msra.mxu1 %v815_v29  ;;  %2940 = vmatprep.subr.mxu0 %v3261_v2 }
  0xb7   : > { %2977 = vmatprep.subr.mxu1 %v3261_v2  ;;  %2941 = vmatpush3.msra.mxu0 %v799_v30  ;;  %v2386_v30 = vld [vmem:[%s4356_s5 + $0x1] ss:$0 sm:$0xff] }
  0xb8   : > { %2978 = vmatpush3.msra.mxu1 %v814_v31  ;;  %2942 = vmatprep.subr.mxu0 %v3261_v2 }
  0xb9   : > { %2979 = vmatprep.subr.mxu1 %v3261_v2  ;;  %2943 = vmatpush3.msra.mxu0 %v798_v32 }
  0xba   : > { %2980 = vmatpush3.msra.mxu1 %v813_v33  ;;  %2944 = vmatprep.subr.mxu0 %v3261_v2 }
  0xbb   : > { %2981 = vmatprep.subr.mxu1 %v3261_v2  ;;  %2945 = vmatpush3.msra.mxu0 %v797_v34 }
  0xbc   : > { %2982 = vmatpush3.msra.mxu1 %v812_v36  ;;  %2946 = vmatprep.subr.mxu0 %v3261_v2 }
  0xbd   : > { %3021 = vmatprep.subr.mxu1 %v3261_v2  ;;  %2984 = vmatmul.mubr.f32.vlgmr.msra.gmra.mxu1 %v3778_v35 }
  0xbe   : > { %3022 = vmatpush3.msra.mxu1 %v859_v37  ;;  %2947 = vmatpush3.msra.mxu0 %v796_v38  ;;  %v2387_v37 = vld [vmem:[%s4356_s5 + $0x2] ss:$0 sm:$0xff]  ;;  %v2388_v38 = vld [vmem:[%s4356_s5 + $0x3] ss:$0 sm:$0xff] }
  0xbf   : > { %3023 = vmatprep.subr.mxu1 %v3261_v2  ;;  %2948 = vmatprep.mubr.msk.f32.mxu0 %vm3262_vm0, %v3261_v2 }
  0xc0   : > { %3024 = vmatpush3.msra.mxu1 %v858_v39  ;;  %2949 = vmatmul.mubr.f32.vlgmr.msra.gmra.mxu0 %v3778_v35 }
  0xc1   : > { %3025 = vmatprep.subr.mxu1 %v3261_v2  ;;  %2986 = vmatprep.subr.mxu0 %v3261_v2 }
  0xc2   : > { %3026 = vmatpush3.msra.mxu1 %v857_v40  ;;  %3053 = vmatprep.mubr.msk.f32.mxu1 %vm3262_vm0, %v3261_v2 }
  0xc3   : > { %3027 = vmatprep.subr.mxu1 %v3261_v2  ;;  %2987 = vmatpush3.msra.mxu0 %v843_v41 }
  0xc4   : > { %3028 = vmatpush3.msra.mxu1 %v856_v42  ;;  %2988 = vmatprep.subr.mxu0 %v3261_v2 }
  0xc5   : > { %3029 = vmatprep.subr.mxu1 %v3261_v2  ;;  %2989 = vmatpush3.msra.mxu0 %v842_v43 }
  0xc6   : > { %3030 = vmatpush3.msra.mxu1 %v855_v44  ;;  %2990 = vmatprep.subr.mxu0 %v3261_v2 }
  0xc7   : > { %3031 = vmatprep.subr.mxu1 %v3261_v2  ;;  %2991 = vmatpush3.msra.mxu0 %v841_v45 }
  0xc8   : > { %3032 = vmatpush3.msra.mxu1 %v854_v46  ;;  %2992 = vmatprep.subr.mxu0 %v3261_v2 }
  0xc9   : > { %3033 = vmatprep.subr.mxu1 %v3261_v2  ;;  %2993 = vmatpush3.msra.mxu0 %v840_v47  ;;  %v2390_v47 = vld [vmem:[%s4356_s5 + $0x5] ss:$0 sm:$0xff] }
  0xca   : > { %3034 = vmatpush3.msra.mxu1 %v853_v48  ;;  %2994 = vmatprep.subr.mxu0 %v3261_v2 }
  0xcb   : > { %3035 = vmatprep.subr.mxu1 %v3261_v2  ;;  %2995 = vmatpush3.msra.mxu0 %v839_v49 }
  0xcc   : > { %3036 = vmatpush3.msra.mxu1 %v852_v50  ;;  %2996 = vmatprep.subr.mxu0 %v3261_v2  ;;  %v2389_v50 = vld [vmem:[%s4356_s5 + $0x4] ss:$0 sm:$0xff] }
  0xcd   : > { %3037 = vmatprep.subr.mxu1 %v3261_v2  ;;  %2997 = vmatpush3.msra.mxu0 %v838_v51 }
  0xce   : > { %3038 = vmatpush3.msra.mxu1 %v851_v52  ;;  %2998 = vmatprep.subr.mxu0 %v3261_v2 }
  0xcf   : > { %3039 = vmatprep.subr.mxu1 %v3261_v2  ;;  %2999 = vmatpush3.msra.mxu0 %v837_v53 }
  0xd0   : > { %3040 = vmatpush3.msra.mxu1 %v850_v54  ;;  %3000 = vmatprep.subr.mxu0 %v3261_v2 }
  0xd1   : > { %3041 = vmatprep.subr.mxu1 %v3261_v2  ;;  %3001 = vmatpush3.msra.mxu0 %v836_v55 }
  0xd2   : > { %3042 = vmatpush3.msra.mxu1 %v849_v56  ;;  %3002 = vmatprep.subr.mxu0 %v3261_v2 }
  0xd3   : > { %3043 = vmatprep.subr.mxu1 %v3261_v2  ;;  %3003 = vmatpush3.msra.mxu0 %v835_v57 }
  0xd4   : > { %3044 = vmatpush3.msra.mxu1 %v848_v58  ;;  %3004 = vmatprep.subr.mxu0 %v3261_v2 }
  0xd5   : > { %3045 = vmatprep.subr.mxu1 %v3261_v2  ;;  %3005 = vmatpush3.msra.mxu0 %v834_v59 }
  0xd6   : > { %3046 = vmatpush3.msra.mxu1 %v847_v60  ;;  %3006 = vmatprep.subr.mxu0 %v3261_v2 }
  0xd7   : > { %3047 = vmatprep.subr.mxu1 %v3261_v2  ;;  %3007 = vmatpush3.msra.mxu0 %v833_v61 }
  0xd8   : > { %3048 = vmatpush3.msra.mxu1 %v846_v62  ;;  %3008 = vmatprep.subr.mxu0 %v3261_v2 }
  0xd9   : > { %3049 = vmatprep.subr.mxu1 %v3261_v2  ;;  %3009 = vmatpush3.msra.mxu0 %v832_v63 }
  0xda   : > { %3050 = vmatpush3.msra.mxu1 %v845_v0  ;;  %3010 = vmatprep.subr.mxu0 %v3261_v2 }
  0xdb   : > { %3051 = vmatprep.subr.mxu1 %v3261_v2  ;;  %3011 = vmatpush3.msra.mxu0 %v831_v1 }
  0xdc   : > { %3052 = vmatpush3.msra.mxu1 %v844_v3  ;;  %3012 = vmatprep.subr.mxu0 %v3261_v2 }
  0xdd   : > { %3054 = vmatmul.mubr.f32.vlgmr.msra.gmra.mxu1 %v3778_v35  ;;  %3056 = vmatprep.subr.mxu1 %v3261_v2 }
  0xde   : > { %3058 = vmatprep.mubr.msk.f32.mxu1 %vm3262_vm0, %v3261_v2  ;;  %3013 = vmatpush3.msra.mxu0 %v830_v4 }
  0xdf   : > { %3014 = vmatprep.subr.mxu0 %v3261_v2  ;;  %3018 = vmatprep.mubr.msk.f32.mxu0 %vm3262_vm0, %v3261_v2 }
  0xe0   : > { %3015 = vmatpush3.msra.mxu0 %v829_v5 }
  0xe1   : > { %3016 = vmatprep.subr.mxu0 %v3261_v2 }
  0xe2   : > { %3017 = vmatpush3.msra.mxu0 %v828_v6 }
  0xe3   : > { %3019 = vmatmul.mubr.f32.vlgmr.msra.gmra.mxu0 %v3778_v35  ;;  %3066 = vmatprep.subr.mxu0 %v3261_v2 }
  0xe4   : > { %3068 = vmatprep.mubr.msk.f32.mxu0 %vm3262_vm0, %v3261_v2 }
  0xf6   : > { %v504_v9 = vpop.f32.mrf.mxu0  ;;  %v574_v10 = vpop.f32.mrf.mxu1 }
  0xf7   : > { %v505_v11 = vadd.f32 %v2381_v7, %v504_v9  ;;  %v575_v12 = vadd.f32 %v2382_v8, %v574_v10 }
  0xf8   : > { %v2670_v13 = vpop.f32.mrf.mxu0  ;;  %v2705_v35 = vpop.f32.mrf.mxu1 }
  0xf9   : > { %719 = vst.msk [vmem:[#allocation3] sm:$0xff] %vm718_vm1, %v505_v11  ;;  %v723_v14 = vmul.f32 0.17677669, %v505_v11  ;;  %720 = vst.msk [vmem:[#allocation3 + $0x8] sm:$0xff] %vm718_vm1, %v575_v12  ;;  %v724_v15 = vmul.f32 0.17677669, %v575_v12 }
  0xfb   : > { %727 = vst.msk [vmem:[#allocation2] sm:$0xff] %vm718_vm1, %v723_v14  ;;  %728 = vst.msk [vmem:[#allocation2 + $0x8] sm:$0xff] %vm718_vm1, %v724_v15 }
 0x102   : > { %v1476_v34 = vld [vmem:[#allocation2] sm:$0xff]  ;;  %v1477_v36 = vld [vmem:[#allocation2 + $0x8] sm:$0xff] }
 0x118   : > { %v644_v18 = vpop.f32.mrf.mxu0  ;;  %v714_v19 = vpop.f32.mrf.mxu1 }
 0x119   : > { %v645_v20 = vadd.f32 %v2383_v16, %v644_v18  ;;  %v715_v21 = vadd.f32 %v2384_v17, %v714_v19 }
 0x11a   : > { %v2740_v22 = vpop.f32.mrf.mxu0  ;;  %v2775_v23 = vpop.f32.mrf.mxu1 }
 0x11b   : > { %721 = vst.msk [vmem:[#allocation3 + $0x10] sm:$0xff] %vm718_vm1, %v645_v20  ;;  %v725_v24 = vmul.f32 0.17677669, %v645_v20  ;;  %722 = vst.msk [vmem:[#allocation3 + $0x18] sm:$0xff] %vm718_vm1, %v715_v21  ;;  %v726_v25 = vmul.f32 0.17677669, %v715_v21 }
 0x11d   : > { %729 = vst.msk [vmem:[#allocation2 + $0x10] sm:$0xff] %vm718_vm1, %v725_v24  ;;  %730 = vst.msk [vmem:[#allocation2 + $0x18] sm:$0xff] %vm718_vm1, %v726_v25 }
 0x124   : > { %v1478_v45 = vld [vmem:[#allocation2 + $0x10] sm:$0xff]  ;;  %v1479_v46 = vld [vmem:[#allocation2 + $0x18] sm:$0xff] }
 0x13a   : > { %v982_v27 = vpop.f32.mrf.mxu0  ;;  %v1052_v28 = vpop.f32.mrf.mxu1 }
 0x13b   : > { %v983_v29 = vadd.f32 %v2385_v26, %v982_v27  ;;  %v1053_v33 = vadd.f32 %v2386_v30, %v1052_v28 }
 0x13c   : > { %v2810_v31 = vpop.f32.mrf.mxu0  ;;  %v2845_v32 = vpop.f32.mrf.mxu1 }
 0x13d   : > { %3057 = vmatpush3.xpose.msk.msra.mxu1 %vm718_vm1, %v983_v29 }
 0x13e   : > { %3061 = vmatprep.subr.mxu1 %v3261_v2 }
 0x140   : > { %3059 = vmatmul.mubr.msk.f32.vlgmr.msra.gmra.mxu1 %vm718_vm1, %v1476_v34 }
 0x141   : > { %3062 = vmatpush3.xpose.msk.msra.mxu1 %vm718_vm1, %v1053_v33  ;;  %3063 = vmatprep.mubr.msk.f32.mxu1 %vm3262_vm0, %v3261_v2 }
 0x142   : > { %3071 = vmatprep.subr.mxu1 %v3261_v2 }
 0x144   : > { %3064 = vmatmul.mubr.msk.f32.vlgmr.msra.gmra.mxu1 %vm718_vm1, %v1477_v36 }
 0x145   : > { %3073 = vmatprep.mubr.msk.f32.mxu1 %vm3262_vm0, %v3261_v2 }
 0x15c   : > { %v1122_v39 = vpop.f32.mrf.mxu0  ;;  %v1192_v40 = vpop.f32.mrf.mxu1 }
 0x15d   : > { %v1123_v41 = vadd.f32 %v2387_v37, %v1122_v39  ;;  %v1193_v42 = vadd.f32 %v2388_v38, %v1192_v40 }
 0x15e   : > { %v2880_v43 = vpop.f32.mrf.mxu0  ;;  %v2915_v44 = vpop.f32.mrf.mxu1 }
 0x15f   : > { %3067 = vmatpush3.xpose.msk.msra.mxu0 %vm718_vm1, %v1123_v41  ;;  %3072 = vmatpush3.xpose.msk.msra.mxu1 %vm718_vm1, %v1193_v42 }
 0x160   : > { %3081 = vmatprep.subr.mxu1 %v3261_v2  ;;  %3076 = vmatprep.subr.mxu0 %v3261_v2 }
 0x162   : > { %3069 = vmatmul.mubr.msk.f32.vlgmr.msra.gmra.mxu0 %vm718_vm1, %v1478_v45  ;;  %3074 = vmatmul.mubr.msk.f32.vlgmr.msra.gmra.mxu1 %vm718_vm1, %v1479_v46 }
 0x163   : > { %3078 = vmatprep.mubr.msk.f32.mxu0 %vm3262_vm0, %v3261_v2  ;;  %3083 = vmatprep.mubr.msk.f32.mxu1 %vm3262_vm0, %v3261_v2 }
 0x17d   : > { %v1332_v48 = vpop.f32.mrf.mxu1 }
 0x17e   : > { %v1333_v49 = vadd.f32 %v2390_v47, %v1332_v48 }
 0x17f   : > { %v2985_v51 = vpop.f32.mrf.mxu1 }
 0x180   : > { %3082 = vmatpush3.msra.mxu1 %v1333_v49  ;;  %v1262_v52 = vpop.f32.mrf.mxu0 }
 0x181   : > { %v1263_v53 = vadd.f32 %v2389_v50, %v1262_v52  ;;  %3091 = vmatprep.subr.mxu1 %v3261_v2 }
 0x182   : > { %v2950_v54 = vpop.f32.mrf.mxu0 }
 0x183   : > { %3077 = vmatpush3.msra.mxu0 %v1263_v53 }
 0x184   : > { %3086 = vmatprep.subr.mxu0 %v3261_v2 }
 0x19d   : > { %v4256_v55 = vpop.f32.mrf.mxu1 }
 0x19f   : > { %v3055_v56 = vpop.f32.mrf.mxu1 }
 0x1a3   : > { %v4258_v57 = vpop.f32.mrf.mxu0 }
 0x1a5   : > { %v3020_v58 = vpop.f32.mrf.mxu0 }
 0x1a6   : > { %v2391_v58 = vld [vmem:[%s4356_s5 + $0x6] ss:$0 sm:$0xff] }
 0x200   : > { %v1553_v59 = vpop.f32.mrf.mxu1 }
 0x201   : > { %v1785_v60 = vsel %vm718_vm1, %v1553_v59, -inf }
 0x202   : > { %v1786_v61 = vrot.slane %v1785_v60, 4  ;;  %v3060_v62 = vpop.f32.mrf.mxu1 }
 0x203   : > { %v2392_v62 = vld [vmem:[%s4356_s5 + $0x7] ss:$0 sm:$0xff] }
 0x204   : > { %v1787_v63 = vmax.f32 %v1785_v60, %v1786_v61  ;;  %v1629_v0 = vpop.f32.mrf.mxu1  ;;  %v1403_v61 = vadd.f32 %v2391_v58, %v4258_v57 }
 0x205   : > { %v1792_v1 = vsel %vm718_vm1, %v1629_v0, -inf }
 0x206   : > { %v1788_v3 = vrot.slane %v1787_v63, 2  ;;  %v1793_v4 = vrot.slane %v1792_v1, 4  ;;  %v3065_v5 = vpop.f32.mrf.mxu1 }
 0x208   : > { %v1789_v6 = vmax.f32 %v1787_v63, %v1788_v3  ;;  %v1794_v7 = vmax.f32 %v1792_v1, %v1793_v4  ;;  %v1473_v1 = vadd.f32 %v2392_v62, %v4256_v55 }
 0x20a   : > { %v1790_v8 = vrot.slane %v1789_v6, 1  ;;  %v1795_v9 = vrot.slane %v1794_v7, 2 }
 0x20c   : > { %v1791_v10 = vmax.f32 %v1789_v6, %v1790_v8  ;;  %v1796_v11 = vmax.f32 %v1794_v7, %v1795_v9 }
 0x20e   : > { %v1813_v12 = vsub.f32 %v1553_v59, %v1791_v10  ;;  %v1797_v13 = vrot.slane %v1796_v11, 1 }
 0x210   : > { %v1817_v35 = vmul.f32 1.442695, %v1813_v12  ;;  %v1798_v14 = vmax.f32 %v1796_v11, %v1797_v13 }
 0x212   : > { %3167 = vpow2.f32 %v1817_v35  ;;  %v1814_v15 = vsub.f32 %v1629_v0, %v1798_v14 }
 0x214   : > { %v1819_v16 = vmul.f32 1.442695, %v1814_v15 }
 0x216   : > { %3169 = vpow2.f32 %v1819_v16 }
 0x21f   : > { %v3168_v17 = vpop.eup %3167 }
 0x220   : > { %v1825_v18 = vsel %vm718_vm1, %v3168_v17, 0.0 }
 0x221   : > { %v1826_v19 = vrot.slane %v1825_v18, 4 }
 0x222   : > { %v1705_v20 = vpop.f32.mrf.mxu0  ;;  %v1781_v21 = vpop.f32.mrf.mxu1 }
 0x223   : > { %v3170_v22 = vpop.eup %3169  ;;  %v1827_v23 = vadd.f32 %v1826_v19, %v1825_v18  ;;  %v1799_v24 = vsel %vm718_vm1, %v1705_v20, -inf  ;;  %v1806_v25 = vsel %vm718_vm1, %v1781_v21, -inf }
 0x224   : > { %v1832_v26 = vsel %vm718_vm1, %v3170_v22, 0.0  ;;  %v1800_v27 = vrot.slane %v1799_v24, 4  ;;  %v1807_v28 = vrot.slane %v1806_v25, 4  ;;  %v3070_v29 = vpop.f32.mrf.mxu0  ;;  %v3075_v30 = vpop.f32.mrf.mxu1 }
 0x225   : > { %v1828_v31 = vrot.slane %v1827_v23, 2  ;;  %v1833_v32 = vrot.slane %v1832_v26, 4 }
 0x226   : > { %v1801_v33 = vmax.f32 %v1799_v24, %v1800_v27  ;;  %v1808_v34 = vmax.f32 %v1806_v25, %v1807_v28  ;;  %v2192_v24 = vld [vmem:[%s4357_s6 + $0x18] sm:$0xff]  ;;  %v2191_v25 = vld [vmem:[%s4357_s6 + $0x10] sm:$0xff] }
 0x227   : > { %v1829_v36 = vadd.f32 %v1828_v31, %v1827_v23  ;;  %v1834_v37 = vadd.f32 %v1833_v32, %v1832_v26  ;;  %v1862_v26 = vld [vmem:[#allocation3 + $0x8] sm:$0xff]  ;;  %v2189_v32 = vld [vmem:[%s4357_s6] sm:$0xff] }
 0x228   : > { %v1802_v38 = vrot.slane %v1801_v33, 2  ;;  %v1809_v39 = vrot.slane %v1808_v34, 2  ;;  %v2190_v31 = vld [vmem:[%s4357_s6 + $0x8] sm:$0xff] }
 0x229   : > { %v1830_v40 = vrot.slane %v1829_v36, 1  ;;  %v1835_v41 = vrot.slane %v1834_v37, 2 }
 0x22a   : > { %v1803_v42 = vmax.f32 %v1801_v33, %v1802_v38  ;;  %v1810_v43 = vmax.f32 %v1808_v34, %v1809_v39  ;;  %v1863_v33 = vld [vmem:[#allocation3 + $0x10] sm:$0xff] }
 0x22b   : > { %v1831_v44 = vadd.f32 %v1830_v40, %v1829_v36  ;;  %v1836_v45 = vadd.f32 %v1835_v41, %v1834_v37  ;;  %v1864_v37 = vld [vmem:[#allocation3 + $0x18] sm:$0xff] }
 0x22c   : > { %v1804_v46 = vrot.slane %v1803_v42, 1  ;;  %v1811_v47 = vrot.slane %v1810_v43, 1 }
 0x22d   : > { %3171 = vrcp.f32 %v1831_v44  ;;  %v1837_v48 = vrot.slane %v1836_v45, 1 }
 0x22e   : > { %v1805_v49 = vmax.f32 %v1803_v42, %v1804_v46  ;;  %v1812_v50 = vmax.f32 %v1810_v43, %v1811_v47 }
 0x22f   : > { %v1838_v51 = vadd.f32 %v1837_v48, %v1836_v45 }
 0x230   : > { %v1815_v52 = vsub.f32 %v1705_v20, %v1805_v49  ;;  %v1816_v53 = vsub.f32 %v1781_v21, %v1812_v50  ;;  %v1861_v20 = vld [vmem:[#allocation3] sm:$0xff] }
 0x231   : > { %3173 = vrcp.f32 %v1838_v51  ;;  %v2405_v50 = vld [vmem:[%s4358_s7] ss:$0 sm:$0xff] }
 0x232   : > { %v1821_v54 = vmul.f32 1.442695, %v1815_v52  ;;  %v1823_v56 = vmul.f32 1.442695, %v1816_v53 }
 0x234   : > { %3175 = vpow2.f32 %v1821_v54 }
 0x235   : > { %3177 = vpow2.f32 %v1823_v56 }
 0x23a   : > { %v3172_v59 = vpop.eup %3171 }
 0x23b   : > { %v1857_v60 = vmul.f32 %v3172_v59, %v3168_v17 }
 0x23d   : > { %3079 = vmatmul.mubr.msk.f32.vlgmr.msra.gmra.mxu0 %vm718_vm1, %v1857_v60 }
 0x23e   : > { %v3174_v63 = vpop.eup %3173  ;;  %3087 = vmatpush3.msra.mxu0 %v1403_v61  ;;  %3088 = vmatprep.mubr.msk.f32.mxu0 %vm3262_vm0, %v3261_v2 }
 0x23f   : > { %v1858_v0 = vmul.f32 %v3174_v63, %v3170_v22  ;;  %3096 = vmatprep.subr.mxu0 %v3261_v2 }
 0x241   : > { %v3176_v3 = vpop.eup %3175  ;;  %3084 = vmatmul.mubr.msk.f32.vlgmr.msra.gmra.mxu1 %vm718_vm1, %v1858_v0 }
 0x242   : > { %v3178_v57 = vpop.eup %3177  ;;  %v1839_v4 = vsel %vm718_vm1, %v3176_v3, 0.0  ;;  %3092 = vmatpush3.msra.mxu1 %v1473_v1  ;;  %3093 = vmatprep.mubr.msk.f32.mxu1 %vm3262_vm0, %v3261_v2 }
 0x243   : > { %v1840_v5 = vrot.slane %v1839_v4, 4  ;;  %v1846_v6 = vsel %vm718_vm1, %v3178_v57, 0.0 }
 0x244   : > { %v1847_v7 = vrot.slane %v1846_v6, 4 }
 0x245   : > { %v1841_v8 = vadd.f32 %v1840_v5, %v1839_v4 }
 0x246   : > { %v1848_v9 = vadd.f32 %v1847_v7, %v1846_v6 }
 0x247   : > { %v1842_v10 = vrot.slane %v1841_v8, 2 }
 0x248   : > { %v1849_v11 = vrot.slane %v1848_v9, 2 }
 0x249   : > { %v1843_v12 = vadd.f32 %v1842_v10, %v1841_v8 }
 0x24a   : > { %v1850_v55 = vadd.f32 %v1849_v11, %v1848_v9 }
 0x24b   : > { %v1844_v13 = vrot.slane %v1843_v12, 1 }
 0x24c   : > { %v1851_v35 = vrot.slane %v1850_v55, 1 }
 0x24d   : > { %v1845_v14 = vadd.f32 %v1844_v13, %v1843_v12 }
 0x24e   : > { %v1852_v15 = vadd.f32 %v1851_v35, %v1850_v55 }
 0x24f   : > { %3179 = vrcp.f32 %v1845_v14 }
 0x250   : > { %3181 = vrcp.f32 %v1852_v15 }
 0x25c   : > { %v3180_v16 = vpop.eup %3179 }
 0x25d   : > { %v3182_v17 = vpop.eup %3181  ;;  %v1859_v18 = vmul.f32 %v3180_v16, %v3176_v3 }
 0x25e   : > { %v1860_v19 = vmul.f32 %v3182_v17, %v3178_v57 }
 0x25f   : > { %3089 = vmatmul.mubr.msk.f32.vlgmr.msra.gmra.mxu0 %vm718_vm1, %v1859_v18 }
 0x260   : > { %3094 = vmatmul.mubr.msk.f32.vlgmr.msra.gmra.mxu1 %vm718_vm1, %v1860_v19  ;;  %3104 = vmatprep.mubr.msk.f32.mxu0 %vm3262_vm0, %v3261_v2 }
 0x261   : > { %3097 = vmatpush3.msra.mxu0 %v2192_v24 }
 0x262   : > { %3098 = vmatprep.subr.mxu0 %v3261_v2 }
 0x263   : > { %3099 = vmatpush3.msra.mxu0 %v2191_v25 }
 0x264   : > { %3100 = vmatprep.subr.mxu0 %v3261_v2 }
 0x265   : > { %3101 = vmatpush3.msra.mxu0 %v2190_v31 }
 0x266   : > { %3102 = vmatprep.subr.mxu0 %v3261_v2 }
 0x267   : > { %3103 = vmatpush3.msra.mxu0 %v2189_v32 }
 0x2fd   : > { %v1934_v21 = vpop.f32.mrf.mxu0 }
 0x2fe   : > { %v2157_v22 = vadd.f32 %v1934_v21, %v1861_v20 }
 0x2ff   : > { %v3080_v23 = vpop.f32.mrf.mxu0 }
 0x300   : > { %2161 = vst.msk [vmem:[#allocation3] sm:$0xff] %vm718_vm1, %v2157_v22 }
 0x301   : > { %v2007_v27 = vpop.f32.mrf.mxu1 }
 0x302   : > { %v2158_v28 = vadd.f32 %v2007_v27, %v1862_v26 }
 0x303   : > { %v3085_v29 = vpop.f32.mrf.mxu1 }
 0x304   : > { %2162 = vst.msk [vmem:[#allocation3 + $0x8] sm:$0xff] %vm718_vm1, %v2158_v28 }
 0x307   : > { %v2168_v44 = vld [vmem:[#allocation3] sm:$0xff] }
 0x30b   : > { %v2169_v30 = vld [vmem:[#allocation3 + $0x8] sm:$0xff] }
 0x30c   : > { %2173 = vrot.lane.b32.xlu0 %v2169_v30, %s3263_s22  ;;  %s329_s22 = scalar_lea.vmem [#allocation4], %s2378_s19 }
 0x30d   : > { %s2291_s23 = sshll.u32 %s329_s22, 4  ;;  %s2292_s23 = int_to_ptr.vmem [resolvable:$true] %s2291_s23 }
 0x30e   : > { %p3190_p1 = scmp.lt.s32.totalorder %s2292_s23, %s3188_s20 }
 0x31f   : > { %v2080_v34 = vpop.f32.mrf.mxu0 }
 0x320   : > { %v2159_v36 = vadd.f32 %v2080_v34, %v1863_v33  ;;  %v2153_v38 = vpop.f32.mrf.mxu1 }
 0x321   : > { %v2160_v39 = vadd.f32 %v2153_v38, %v1864_v37  ;;  %v3090_v40 = vpop.f32.mrf.mxu0 }
 0x322   : > { %2163 = vst.msk [vmem:[#allocation3 + $0x10] sm:$0xff] %vm718_vm1, %v2159_v36  ;;  %v3095_v41 = vpop.f32.mrf.mxu1 }
 0x323   : > { %2164 = vst.msk [vmem:[#allocation3 + $0x18] sm:$0xff] %vm718_vm1, %v2160_v39 }
 0x329   : > { %v2170_v42 = vld [vmem:[#allocation3 + $0x10] sm:$0xff] }
 0x32a   : > { %v2171_v43 = vld [vmem:[#allocation3 + $0x18] sm:$0xff]  ;;  %2177 = vrot.lane.b32.xlu0 %v2170_v42, %s3264_s11  ;;  %s2278_s11 = scalar_lea.sflag [#allocation5], %s327_s16 }
 0x32b   : > { %2181 = vrot.lane.b32.xlu1 %v2171_v43, %s3265_s14  ;;  %s3183_s14 = scalar_lea.vmem %s2292_s23, 128 }
 0x32c   : > { %p3184_p12 = scmp.ne.s32.totalorder %s2292_s23, %s3183_s14  ;;  %p3191_p2 = scmp.lt.s32.totalorder %s3189_s30, %s3183_s14 }
 0x32e   : > { %p3185_p13 = pnand %p3184_p12, %p3352_p4  ;;  %p3192_p3 = por %p3191_p2, %p3190_p1 }
 0x330   : > { %p3186_p0 = pneg %p3185_p13 }
 0x332   : > { %p3193_p5 = pnand %p3192_p3, %p3186_p0 }
 0x37e   : > { %v2174_v2 = vpop.permute.xlu0 %2173 }
 0x37f   : > { %v2184_v45 = vsel %vm718_vm1, %v2168_v44, %v2174_v2 }
 0x39c   : > { %v2178_v46 = vpop.permute.xlu0 %2177 }
 0x39d   : > { %v2182_v47 = vpop.permute.xlu1 %2181  ;;  %v2186_v48 = vsel %vm2185_vm2, %v2184_v45, %v2178_v46 }
 0x39e   : > { %v2188_v49 = vsel %vm2187_vm3, %v2186_v48, %v2182_v47 }
 0x39f   : > { %3105 = vmatmul.mubr.msk.f32.vlgmr.msra.gmra.mxu0 %vm2200_vm4, %v2188_v49 }
 0x45f   : > { %v2270_v51 = vpop.f32.mrf.mxu0 }
 0x460   : > { %v2271_v52 = vadd.f32 %v2405_v50, %v2270_v51 }
 0x461   : > { %v3106_v53 = vpop.f32.mrf.mxu0 }
 0x462   : > { %v2274_v54 = vmax.f32 %v2271_v52, 0.0 }
 0x464   : > { %v2275_v56 = vadd.f32 %v2274_v54, %v2188_v49 }
 0x466   : > { %2276 = vst.msk [vmem:[%s329_s22] sm:$0xff] %vm2200_vm4, %v2275_v56 }
 0x467   : > { %3196 = shalt.err (!%p3193_p5)
}
 0x468   : > { %s3197_s19 = scalar_lea.hbm %s2289_s26, 128  ;;  %s3201_s22 = scalar_lea.hbm %s4359_s8, 256 }
 0x469   : > { %p3198_p6 = scmp.ne.s32.totalorder %s2289_s26, %s3197_s19  ;;  %p3202_p10 = scmp.lt.s32.totalorder %s2289_s26, %s4359_s8 }
 0x46a   : > { %p3203_p11 = scmp.lt.s32.totalorder %s3201_s22, %s3197_s19 }
 0x46b   : > { %p3199_p7 = pnand %p3198_p6, %p3352_p4 }
 0x46c   : > { %p3204_p12 = por %p3203_p11, %p3202_p10 }
 0x46d   : > { %p3200_p9 = pneg %p3199_p7 }
 0x46f   : > { %p3205_p13 = pnand %p3204_p12, %p3200_p9 }
 0x471   : > { %3208 = shalt.err (!%p3205_p13)
}
 0x472   : > { %3107 = dma.vmem_to_hbm [thread:$0]  (%p3352_p4), %s2292_s23, 128, %s2289_s26, %s2278_s11  }
 0x473 PF: > { %p3113_p0 = scmp.ge.s32.totalorder %s3259_s10, 2  ;;  %s2303_s14 = sand.u32 1, %s3239_s27  }
 0x474   : > { %s2304_s12 = scalar_lea.sflag [#allocation5], %s2303_s14 }
 0x475   : > { %p3110_p1 = pnand %p3113_p0, %p3359_p8 }
 0x477   : > { %p3111_p2 = pneg %p3110_p1 }
 0x479   : > { %3234 = dma.done.wait (%p3111_p2), %s2304_s12, 128  }
 0x47a   : > { %3236 = vsyncadd (%p3111_p2), %s2304_s12, 4294967168  ;;  %s21_s10 = sadd.s32 1, %s3259_s10   ;;  %s4362_s27 = smov %s3243_s28 }
 0x47b   : > { %p18_p3 = scmp.ge.s32.totalorder %s21_s10, 4   ;;  %s4363_s28 = smov %s3247_s29 }
 0x47c   : > { %s4364_s29 = smov %s3365_s18  ;;  %s4365_s30 = smov %s3255_s9 }
 0x47d   : > { %s4366_s9 = smov %s4368_s13  ;;  %20 = sbr.rel (!%p18_p3) target bundleno = 4 (0x4), region = 98 }
 0x482   :  { %2309 = vsyncpa [#allocation5], 1 }
 0x483   :  { %2311 = vsyncpa [#allocation5 + $0x1], 1 }

</bundles_post_ra>
